<compile_context>
chip_gen: v7x
topology: tpu7x:2x2x1
jax: 0.10.0
libtpu: 0.0.40
codegen_flags: <defaults>
</compile_context>

<pallas_src>
import functools

import jax
import jax.numpy as jnp
from jax.experimental import pallas as pl
from jax.experimental.pallas import tpu as pltpu


def _round_up(x, m):
    return (x + m - 1) // m * m


# ----------------------------- fused kernel --------------------------------


def make_dl_kernel(num_layers, T, B, B_pad, H):
    """Fused stacked-LSTM + Linear forward kernel.

    Ref order:
      x_ref                : (B*T, I0)  row = b*T + t (free reshape of (B,T,I))
      per layer l          : wih_ref (I_l, 4H), whh_ref (H, 4H), b_ref (1, 4H)
                             gate columns pre-permuted to [i, f, o, g]
      fc_w_ref, fc_b_ref   : (H, K_pad), (1, K_pad)   lane-dense padded
      out_ref              : (B_pad, K_pad)
      xw_scr  (scratch)    : (T*B_pad, 4H) hoisted input projection, time-major
      hseq_scr (scratch)   : (T*B_pad, H)  inter-layer hidden sequence
    """
    G = 4 * H
    f32 = jnp.float32

    def kernel(*refs):
        x_ref = refs[0]
        fc_w_ref = refs[1 + 3 * num_layers]
        fc_b_ref = refs[2 + 3 * num_layers]
        out_ref = refs[3 + 3 * num_layers]
        xw_scr = refs[4 + 3 * num_layers]
        hseq_scr = refs[5 + 3 * num_layers]

        # Zero scratch once so padded batch rows stay finite.  No kernel op
        # mixes data across batch rows, so pad rows never contaminate real rows.
        xw_scr[...] = jnp.zeros_like(xw_scr)
        hseq_scr[...] = jnp.zeros_like(hseq_scr)

        # ---- layer 0: hoisted input projection (+bias), then a one-time
        # scatter to the time-major, batch-padded layout (row = t*B_pad + b).
        wih0 = refs[1][...]
        b0 = refs[3][...].astype(f32)
        x_bt = x_ref[...].astype(f32)                       # (B*T, I0), row = b*T + t
        I0 = x_bt.shape[1]
        if I0 <= 8:
            # Tiny contraction dim: broadcast FMAs on the VPU instead of a
            # K=I0 MXU push (keeps the MXU free for the recurrence matmuls).
            wih0_f = wih0.astype(f32)
            acc = jnp.zeros((x_bt.shape[0], G), f32) + b0
            for i in range(I0):
                acc = acc + x_bt[:, i:i + 1] * wih0_f[i:i + 1, :]
            xw_bt = acc                                      # (B*T, 4H)
        else:
            xw_bt = (
                jnp.dot(x_bt.astype(wih0.dtype), wih0,
                        preferred_element_type=f32) + b0
            )
        for t in range(T):
            for b in range(B):
                src = b * T + t
                dst = t * B_pad + b
                xw_scr[dst:dst + 1, :] = xw_bt[src:src + 1, :]

        # ---- recurrence, layer by layer (T static -> fully unrolled) ----
        h = None
        for layer in range(num_layers):
            whh = refs[2 + 3 * layer][...]                   # (H, 4H)

            if layer > 0:
                # Hoisted input projection for this layer: one aligned matmul
                # over the whole (T*B_pad, H) inter-layer sequence.
                wih = refs[1 + 3 * layer][...]               # (H, 4H)
                bias = refs[3 + 3 * layer][...].astype(f32)
                seq = hseq_scr[...]
                xw_scr[...] = (
                    jnp.dot(seq.astype(wih.dtype), wih,
                            preferred_element_type=f32) + bias
                )

            h = jnp.zeros((B_pad, H), f32)
            c = jnp.zeros((B_pad, H), f32)
            for t in range(T):
                xw_t = xw_scr[t * B_pad:(t + 1) * B_pad, :]          # aligned tile
                gates = xw_t + jnp.dot(h.astype(whh.dtype), whh,
                                       preferred_element_type=f32)   # (B_pad, 4H)
                # gate order [i, f, o | g]: sigmoid over 3H lanes, tanh over H.
                ifo = jax.nn.sigmoid(gates[:, :3 * H])
                g_g = jnp.tanh(gates[:, 3 * H:])
                i_g = ifo[:, 0 * H:1 * H]
                f_g = ifo[:, 1 * H:2 * H]
                o_g = ifo[:, 2 * H:3 * H]
                c = f_g * c + i_g * g_g
                h = o_g * jnp.tanh(c)
                if layer < num_layers - 1:
                    hseq_scr[t * B_pad:(t + 1) * B_pad, :] = h       # aligned store

        # ---- final Linear on last hidden state; lane-dense (B_pad, K_pad) ----
        fc_w = fc_w_ref[...]
        out_ref[...] = (
            jnp.dot(h.astype(fc_w.dtype), fc_w, preferred_element_type=f32)
            + fc_b_ref[...].astype(f32)
        ).astype(out_ref.dtype)

    return kernel


# ----------------------------- wrapper --------------------------------------

_VMEM = pl.BlockSpec(memory_space=pltpu.MemorySpace.VMEM)


@functools.partial(jax.jit, static_argnames=("num_keys",))
def dl_forward(x, lstm_params, fc_w_p, fc_b_p, *, num_keys):
    """DL forward: stacked LSTM (zero init state) + Linear on the last step.

    x           : (B, T, input_size) float32
    lstm_params : per layer (wih_t (I_l, 4H), whh_t (H, 4H), b (1, 4H)),
                  gate columns permuted to [i, f, o, g]
    fc_w_p      : (H, K_pad) lane-padded, fc_b_p : (1, K_pad)
    returns     : (B, num_keys) float32
    """
    B, T, I = x.shape
    H = lstm_params[0][1].shape[0]
    K_pad = fc_w_p.shape[1]
    num_layers = len(lstm_params)
    B_pad = max(8, _round_up(B, 8))

    x_bt = x.reshape(B * T, I)   # leading-dim collapse: layout-free, no transpose

    args = [x_bt]
    for (wih_t, whh_t, b) in lstm_params:
        args += [wih_t, whh_t, b]
    args += [fc_w_p, fc_b_p]

    kernel = make_dl_kernel(num_layers, T, B, B_pad, H)
    out_pad = pl.pallas_call(
        kernel,
        out_shape=jax.ShapeDtypeStruct((B_pad, K_pad), jnp.float32),
        in_specs=[_VMEM] * len(args),
        out_specs=_VMEM,
        scratch_shapes=[
            pltpu.VMEM((T * B_pad, 4 * H), jnp.float32),
            pltpu.VMEM((T * B_pad, H), jnp.float32),
        ],
    )(*args)
    return out_pad[:B, :num_keys]


# ----------------------------- parameter prep -------------------------------


def init_params(key, input_size, hidden_size, num_layers, num_keys):
    """PyTorch-style init; canonical (gate order i,f,g,o) transposed params."""
    scale = 1.0 / jnp.sqrt(hidden_size)
    lstm_params = []
    in_size = input_size
    for _ in range(num_layers):
        key, k1, k2, k3, k4 = jax.random.split(key, 5)
        w_ih = jax.random.uniform(k1, (4 * hidden_size, in_size), jnp.float32, -scale, scale)
        w_hh = jax.random.uniform(k2, (4 * hidden_size, hidden_size), jnp.float32, -scale, scale)
        b_ih = jax.random.uniform(k3, (4 * hidden_size,), jnp.float32, -scale, scale)
        b_hh = jax.random.uniform(k4, (4 * hidden_size,), jnp.float32, -scale, scale)
        lstm_params.append(
            (w_ih.T, w_hh.T, (b_ih + b_hh).reshape(1, 4 * hidden_size))
        )
        in_size = hidden_size
    key, k5, k6 = jax.random.split(key, 3)
    fc_w = jax.random.uniform(k5, (num_keys, hidden_size), jnp.float32, -scale, scale)
    fc_b = jax.random.uniform(k6, (num_keys,), jnp.float32, -scale, scale)
    return lstm_params, fc_w.T, fc_b.reshape(1, num_keys)


def prepare_kernel_params(lstm_params, fc_w_t, fc_b, *, weight_dtype=jnp.bfloat16, lane=128):
    """Permute gates [i,f,g,o]->[i,f,o,g], cast weights, lane-pad the fc head."""
    H = lstm_params[0][1].shape[0]
    perm = jnp.concatenate(
        [jnp.arange(0, 2 * H), jnp.arange(3 * H, 4 * H), jnp.arange(2 * H, 3 * H)])
    kp = []
    for (wih_t, whh_t, b) in lstm_params:
        kp.append((wih_t[:, perm].astype(weight_dtype),
                   whh_t[:, perm].astype(weight_dtype),
                   b[:, perm].astype(jnp.float32)))
    K = fc_w_t.shape[1]
    K_pad = max(lane, _round_up(K, lane))
    fc_w_p = jnp.zeros((fc_w_t.shape[0], K_pad), weight_dtype).at[:, :K].set(
        fc_w_t.astype(weight_dtype))
    fc_b_p = jnp.zeros((1, K_pad), jnp.float32).at[:, :K].set(fc_b.astype(jnp.float32))
    return kp, fc_w_p, fc_b_p


# ----------------------------- reference (pure JAX, full f32) ---------------


def dl_reference(x, lstm_params, fc_w_t, fc_b):
    B, T, _ = x.shape
    hi = jax.lax.Precision.HIGHEST
    seq = x
    h_T = None
    for (wih_t, whh_t, b) in lstm_params:
        H = whh_t.shape[0]

        def step(carry, x_t, wih_t=wih_t, whh_t=whh_t, b=b, H=H):
            h, c = carry
            gates = (jnp.dot(x_t, wih_t, precision=hi)
                     + jnp.dot(h, whh_t, precision=hi) + b)
            i = jax.nn.sigmoid(gates[:, 0 * H:1 * H])
            f = jax.nn.sigmoid(gates[:, 1 * H:2 * H])
            g = jnp.tanh(gates[:, 2 * H:3 * H])
            o = jax.nn.sigmoid(gates[:, 3 * H:4 * H])
            c = f * c + i * g
            h = o * jnp.tanh(c)
            return (h, c), h

        init = (jnp.zeros((B, H), jnp.float32), jnp.zeros((B, H), jnp.float32))
        (h_T, _), outs = jax.lax.scan(step, init, jnp.transpose(seq, (1, 0, 2)))
        seq = jnp.transpose(outs, (1, 0, 2))
    return jnp.dot(h_T, fc_w_t, precision=hi) + fc_b


# ----------------------------- main -----------------------------------------

if __name__ == "__main__":
    input_size, hidden_size, num_layers, num_keys = 4, 32, 2, 10
    B, T = 2, 8

    key = jax.random.PRNGKey(0)
    key, kx = jax.random.split(key)
    x = jax.random.normal(kx, (B, T, input_size), jnp.float32)

    lstm_params, fc_w_t, fc_b = init_params(
        key, input_size, hidden_size, num_layers, num_keys)
    ref = dl_reference(x, lstm_params, fc_w_t, fc_b)

    # f32-weight variant: tight numerical check of the kernel.
    kp32, fcw32, fcb32 = prepare_kernel_params(
        lstm_params, fc_w_t, fc_b, weight_dtype=jnp.float32)
    out32 = jax.block_until_ready(dl_forward(x, kp32, fcw32, fcb32, num_keys=num_keys))
    assert out32.shape == (B, num_keys)
    assert jnp.allclose(out32, ref, atol=2e-3, rtol=2e-3), (out32, ref)

    # bf16-weight variant (preferred MXU operand dtype on v6e/v7x; gates/c/h f32).
    kpbf, fcwbf, fcbbf = prepare_kernel_params(
        lstm_params, fc_w_t, fc_b, weight_dtype=jnp.bfloat16)
    outbf = jax.block_until_ready(dl_forward(x, kpbf, fcwbf, fcbbf, num_keys=num_keys))
    assert outbf.shape == (B, num_keys)
    assert jnp.allclose(outbf, ref, atol=3e-2, rtol=3e-2), (outbf, ref)

    print("KERNEL_OK")
</pallas_src>

<mosaic_0001>
module attributes {stable_mosaic.version = 11 : i64} {
  func.func @kernel(%arg0: memref<16x4xf32, #tpu.memory_space<vmem>>, %arg1: memref<4x128xf32, #tpu.memory_space<vmem>>, %arg2: memref<32x128xf32, #tpu.memory_space<vmem>>, %arg3: memref<1x128xf32, #tpu.memory_space<vmem>>, %arg4: memref<32x128xf32, #tpu.memory_space<vmem>>, %arg5: memref<32x128xf32, #tpu.memory_space<vmem>>, %arg6: memref<1x128xf32, #tpu.memory_space<vmem>>, %arg7: memref<32x128xf32, #tpu.memory_space<vmem>>, %arg8: memref<1x128xf32, #tpu.memory_space<vmem>>, %arg9: memref<8x128xf32, #tpu.memory_space<vmem>>, %arg10: memref<64x128xf32, #tpu.memory_space<vmem>>, %arg11: memref<64x32xf32, #tpu.memory_space<vmem>>) attributes {dimension_semantics = [], scalar_prefetch = 0 : i64, scratch_operands = 2 : i64, tpu.core_type = #tpu.core_type<tc>} {
    %cst = arith.constant 0.000000e+00 : f32
    %0 = vector.broadcast %cst : f32 to vector<64x128xf32>
    %c0 = arith.constant 0 : index
    %c0_0 = arith.constant 0 : index
    %1 = vector.load %arg10[%c0, %c0_0] : memref<64x128xf32, #tpu.memory_space<vmem>>, vector<64x128xf32>
    tpu.vector_store %arg10[%c0, %c0_0], %0 {strides = array<i32>} : memref<64x128xf32, #tpu.memory_space<vmem>>, vector<64x128xf32>,
    %cst_1 = arith.constant 0.000000e+00 : f32
    %2 = vector.broadcast %cst_1 : f32 to vector<64x32xf32>
    %c0_2 = arith.constant 0 : index
    %c0_3 = arith.constant 0 : index
    %3 = vector.load %arg11[%c0_2, %c0_3] : memref<64x32xf32, #tpu.memory_space<vmem>>, vector<64x32xf32>
    tpu.vector_store %arg11[%c0_2, %c0_3], %2 {strides = array<i32>} : memref<64x32xf32, #tpu.memory_space<vmem>>, vector<64x32xf32>,
    %c0_4 = arith.constant 0 : index
    %c0_5 = arith.constant 0 : index
    %4 = vector.load %arg1[%c0_4, %c0_5] : memref<4x128xf32, #tpu.memory_space<vmem>>, vector<4x128xf32>
    %c0_6 = arith.constant 0 : index
    %c0_7 = arith.constant 0 : index
    %5 = vector.load %arg3[%c0_6, %c0_7] : memref<1x128xf32, #tpu.memory_space<vmem>>, vector<1x128xf32>
    %c0_8 = arith.constant 0 : index
    %c0_9 = arith.constant 0 : index
    %6 = vector.load %arg0[%c0_8, %c0_9] : memref<16x4xf32, #tpu.memory_space<vmem>>, vector<16x4xf32>
    %cst_10 = arith.constant 0.000000e+00 : f32
    %7 = vector.broadcast %cst_10 : f32 to vector<16x128xf32>
    %8 = vector.broadcast %5 : vector<1x128xf32> to vector<16x128xf32>
    %9 = arith.addf %7, %8 : vector<16x128xf32>
    %10 = vector.extract_strided_slice %6 {offsets = [0, 0], sizes = [16, 1], strides = [1, 1]} : vector<16x4xf32> to vector<16x1xf32>
    %11 = vector.extract_strided_slice %4 {offsets = [0, 0], sizes = [1, 128], strides = [1, 1]} : vector<4x128xf32> to vector<1x128xf32>
    %12 = vector.broadcast %10 : vector<16x1xf32> to vector<16x128xf32>
    %13 = vector.broadcast %11 : vector<1x128xf32> to vector<16x128xf32>
    %14 = arith.mulf %12, %13 : vector<16x128xf32>
    %15 = arith.addf %9, %14 : vector<16x128xf32>
    %16 = vector.extract_strided_slice %6 {offsets = [0, 1], sizes = [16, 1], strides = [1, 1]} : vector<16x4xf32> to vector<16x1xf32>
    %17 = vector.extract_strided_slice %4 {offsets = [1, 0], sizes = [1, 128], strides = [1, 1]} : vector<4x128xf32> to vector<1x128xf32>
    %18 = vector.broadcast %16 : vector<16x1xf32> to vector<16x128xf32>
    %19 = vector.broadcast %17 : vector<1x128xf32> to vector<16x128xf32>
    %20 = arith.mulf %18, %19 : vector<16x128xf32>
    %21 = arith.addf %15, %20 : vector<16x128xf32>
    %22 = vector.extract_strided_slice %6 {offsets = [0, 2], sizes = [16, 1], strides = [1, 1]} : vector<16x4xf32> to vector<16x1xf32>
    %23 = vector.extract_strided_slice %4 {offsets = [2, 0], sizes = [1, 128], strides = [1, 1]} : vector<4x128xf32> to vector<1x128xf32>
    %24 = vector.broadcast %22 : vector<16x1xf32> to vector<16x128xf32>
    %25 = vector.broadcast %23 : vector<1x128xf32> to vector<16x128xf32>
    %26 = arith.mulf %24, %25 : vector<16x128xf32>
    %27 = arith.addf %21, %26 : vector<16x128xf32>
    %28 = vector.extract_strided_slice %6 {offsets = [0, 3], sizes = [16, 1], strides = [1, 1]} : vector<16x4xf32> to vector<16x1xf32>
    %29 = vector.extract_strided_slice %4 {offsets = [3, 0], sizes = [1, 128], strides = [1, 1]} : vector<4x128xf32> to vector<1x128xf32>
    %30 = vector.broadcast %28 : vector<16x1xf32> to vector<16x128xf32>
    %31 = vector.broadcast %29 : vector<1x128xf32> to vector<16x128xf32>
    %32 = arith.mulf %30, %31 : vector<16x128xf32>
    %33 = arith.addf %27, %32 : vector<16x128xf32>
    %34 = vector.extract_strided_slice %33 {offsets = [0, 0], sizes = [1, 128], strides = [1, 1]} : vector<16x128xf32> to vector<1x128xf32>
    %c0_11 = arith.constant 0 : index
    %c0_12 = arith.constant 0 : index
    %35 = vector.load %arg10[%c0_11, %c0_12] : memref<64x128xf32, #tpu.memory_space<vmem>>, vector<1x128xf32>
    tpu.vector_store %arg10[%c0_11, %c0_12], %34 {strides = array<i32>} : memref<64x128xf32, #tpu.memory_space<vmem>>, vector<1x128xf32>,
    %36 = vector.extract_strided_slice %33 {offsets = [8, 0], sizes = [1, 128], strides = [1, 1]} : vector<16x128xf32> to vector<1x128xf32>
    %c1 = arith.constant 1 : index
    %c0_13 = arith.constant 0 : index
    %37 = vector.load %arg10[%c1, %c0_13] : memref<64x128xf32, #tpu.memory_space<vmem>>, vector<1x128xf32>
    tpu.vector_store %arg10[%c1, %c0_13], %36 {strides = array<i32>} : memref<64x128xf32, #tpu.memory_space<vmem>>, vector<1x128xf32>,
    %38 = vector.extract_strided_slice %33 {offsets = [1, 0], sizes = [1, 128], strides = [1, 1]} : vector<16x128xf32> to vector<1x128xf32>
    %c8 = arith.constant 8 : index
    %c0_14 = arith.constant 0 : index
    %39 = vector.load %arg10[%c8, %c0_14] : memref<64x128xf32, #tpu.memory_space<vmem>>, vector<1x128xf32>
    tpu.vector_store %arg10[%c8, %c0_14], %38 {strides = array<i32>} : memref<64x128xf32, #tpu.memory_space<vmem>>, vector<1x128xf32>,
    %40 = vector.extract_strided_slice %33 {offsets = [9, 0], sizes = [1, 128], strides = [1, 1]} : vector<16x128xf32> to vector<1x128xf32>
    %c9 = arith.constant 9 : index
    %c0_15 = arith.constant 0 : index
    %41 = vector.load %arg10[%c9, %c0_15] : memref<64x128xf32, #tpu.memory_space<vmem>>, vector<1x128xf32>
    tpu.vector_store %arg10[%c9, %c0_15], %40 {strides = array<i32>} : memref<64x128xf32, #tpu.memory_space<vmem>>, vector<1x128xf32>,
    %42 = vector.extract_strided_slice %33 {offsets = [2, 0], sizes = [1, 128], strides = [1, 1]} : vector<16x128xf32> to vector<1x128xf32>
    %c16 = arith.constant 16 : index
    %c0_16 = arith.constant 0 : index
    %43 = vector.load %arg10[%c16, %c0_16] : memref<64x128xf32, #tpu.memory_space<vmem>>, vector<1x128xf32>
    tpu.vector_store %arg10[%c16, %c0_16], %42 {strides = array<i32>} : memref<64x128xf32, #tpu.memory_space<vmem>>, vector<1x128xf32>,
    %44 = vector.extract_strided_slice %33 {offsets = [10, 0], sizes = [1, 128], strides = [1, 1]} : vector<16x128xf32> to vector<1x128xf32>
    %c17 = arith.constant 17 : index
    %c0_17 = arith.constant 0 : index
    %45 = vector.load %arg10[%c17, %c0_17] : memref<64x128xf32, #tpu.memory_space<vmem>>, vector<1x128xf32>
    tpu.vector_store %arg10[%c17, %c0_17], %44 {strides = array<i32>} : memref<64x128xf32, #tpu.memory_space<vmem>>, vector<1x128xf32>,
    %46 = vector.extract_strided_slice %33 {offsets = [3, 0], sizes = [1, 128], strides = [1, 1]} : vector<16x128xf32> to vector<1x128xf32>
    %c24 = arith.constant 24 : index
    %c0_18 = arith.constant 0 : index
    %47 = vector.load %arg10[%c24, %c0_18] : memref<64x128xf32, #tpu.memory_space<vmem>>, vector<1x128xf32>
    tpu.vector_store %arg10[%c24, %c0_18], %46 {strides = array<i32>} : memref<64x128xf32, #tpu.memory_space<vmem>>, vector<1x128xf32>,
    %48 = vector.extract_strided_slice %33 {offsets = [11, 0], sizes = [1, 128], strides = [1, 1]} : vector<16x128xf32> to vector<1x128xf32>
    %c25 = arith.constant 25 : index
    %c0_19 = arith.constant 0 : index
    %49 = vector.load %arg10[%c25, %c0_19] : memref<64x128xf32, #tpu.memory_space<vmem>>, vector<1x128xf32>
    tpu.vector_store %arg10[%c25, %c0_19], %48 {strides = array<i32>} : memref<64x128xf32, #tpu.memory_space<vmem>>, vector<1x128xf32>,
    %50 = vector.extract_strided_slice %33 {offsets = [4, 0], sizes = [1, 128], strides = [1, 1]} : vector<16x128xf32> to vector<1x128xf32>
    %c32 = arith.constant 32 : index
    %c0_20 = arith.constant 0 : index
    %51 = vector.load %arg10[%c32, %c0_20] : memref<64x128xf32, #tpu.memory_space<vmem>>, vector<1x128xf32>
    tpu.vector_store %arg10[%c32, %c0_20], %50 {strides = array<i32>} : memref<64x128xf32, #tpu.memory_space<vmem>>, vector<1x128xf32>,
    %52 = vector.extract_strided_slice %33 {offsets = [12, 0], sizes = [1, 128], strides = [1, 1]} : vector<16x128xf32> to vector<1x128xf32>
    %c33 = arith.constant 33 : index
    %c0_21 = arith.constant 0 : index
    %53 = vector.load %arg10[%c33, %c0_21] : memref<64x128xf32, #tpu.memory_space<vmem>>, vector<1x128xf32>
    tpu.vector_store %arg10[%c33, %c0_21], %52 {strides = array<i32>} : memref<64x128xf32, #tpu.memory_space<vmem>>, vector<1x128xf32>,
    %54 = vector.extract_strided_slice %33 {offsets = [5, 0], sizes = [1, 128], strides = [1, 1]} : vector<16x128xf32> to vector<1x128xf32>
    %c40 = arith.constant 40 : index
    %c0_22 = arith.constant 0 : index
    %55 = vector.load %arg10[%c40, %c0_22] : memref<64x128xf32, #tpu.memory_space<vmem>>, vector<1x128xf32>
    tpu.vector_store %arg10[%c40, %c0_22], %54 {strides = array<i32>} : memref<64x128xf32, #tpu.memory_space<vmem>>, vector<1x128xf32>,
    %56 = vector.extract_strided_slice %33 {offsets = [13, 0], sizes = [1, 128], strides = [1, 1]} : vector<16x128xf32> to vector<1x128xf32>
    %c41 = arith.constant 41 : index
    %c0_23 = arith.constant 0 : index
    %57 = vector.load %arg10[%c41, %c0_23] : memref<64x128xf32, #tpu.memory_space<vmem>>, vector<1x128xf32>
    tpu.vector_store %arg10[%c41, %c0_23], %56 {strides = array<i32>} : memref<64x128xf32, #tpu.memory_space<vmem>>, vector<1x128xf32>,
    %58 = vector.extract_strided_slice %33 {offsets = [6, 0], sizes = [1, 128], strides = [1, 1]} : vector<16x128xf32> to vector<1x128xf32>
    %c48 = arith.constant 48 : index
    %c0_24 = arith.constant 0 : index
    %59 = vector.load %arg10[%c48, %c0_24] : memref<64x128xf32, #tpu.memory_space<vmem>>, vector<1x128xf32>
    tpu.vector_store %arg10[%c48, %c0_24], %58 {strides = array<i32>} : memref<64x128xf32, #tpu.memory_space<vmem>>, vector<1x128xf32>,
    %60 = vector.extract_strided_slice %33 {offsets = [14, 0], sizes = [1, 128], strides = [1, 1]} : vector<16x128xf32> to vector<1x128xf32>
    %c49 = arith.constant 49 : index
    %c0_25 = arith.constant 0 : index
    %61 = vector.load %arg10[%c49, %c0_25] : memref<64x128xf32, #tpu.memory_space<vmem>>, vector<1x128xf32>
    tpu.vector_store %arg10[%c49, %c0_25], %60 {strides = array<i32>} : memref<64x128xf32, #tpu.memory_space<vmem>>, vector<1x128xf32>,
    %62 = vector.extract_strided_slice %33 {offsets = [7, 0], sizes = [1, 128], strides = [1, 1]} : vector<16x128xf32> to vector<1x128xf32>
    %c56 = arith.constant 56 : index
    %c0_26 = arith.constant 0 : index
    %63 = vector.load %arg10[%c56, %c0_26] : memref<64x128xf32, #tpu.memory_space<vmem>>, vector<1x128xf32>
    tpu.vector_store %arg10[%c56, %c0_26], %62 {strides = array<i32>} : memref<64x128xf32, #tpu.memory_space<vmem>>, vector<1x128xf32>,
    %64 = vector.extract_strided_slice %33 {offsets = [15, 0], sizes = [1, 128], strides = [1, 1]} : vector<16x128xf32> to vector<1x128xf32>
    %c57 = arith.constant 57 : index
    %c0_27 = arith.constant 0 : index
    %65 = vector.load %arg10[%c57, %c0_27] : memref<64x128xf32, #tpu.memory_space<vmem>>, vector<1x128xf32>
    tpu.vector_store %arg10[%c57, %c0_27], %64 {strides = array<i32>} : memref<64x128xf32, #tpu.memory_space<vmem>>, vector<1x128xf32>,
    %c0_28 = arith.constant 0 : index
    %c0_29 = arith.constant 0 : index
    %66 = vector.load %arg2[%c0_28, %c0_29] : memref<32x128xf32, #tpu.memory_space<vmem>>, vector<32x128xf32>
    %cst_30 = arith.constant 0.000000e+00 : f32
    %67 = vector.broadcast %cst_30 : f32 to vector<8x32xf32>
    %cst_31 = arith.constant 0.000000e+00 : f32
    %68 = vector.broadcast %cst_31 : f32 to vector<8x32xf32>
    %c0_32 = arith.constant 0 : index
    %c0_33 = arith.constant 0 : index
    %69 = vector.load %arg10[%c0_32, %c0_33] : memref<64x128xf32, #tpu.memory_space<vmem>>, vector<8x128xf32>
    %cst_34 = arith.constant dense<0.000000e+00> : vector<8x128xf32>
    %70 = tpu.matmul %67, %66, %cst_34 {dimension_numbers = #tpu.dot_dimension_numbers<[1], [0], [0], [1], [0, 0, 1, 1], [], []>} : vector<8x32xf32>, vector<32x128xf32>, vector<8x128xf32> -> vector<8x128xf32>
    %71 = arith.addf %69, %70 : vector<8x128xf32>
    %72 = vector.extract_strided_slice %71 {offsets = [0, 0], sizes = [8, 96], strides = [1, 1]} : vector<8x128xf32> to vector<8x96xf32>
    %73 = arith.negf %72 : vector<8x96xf32>
    %74 = math.exp %73 : vector<8x96xf32>
    %cst_35 = arith.constant 1.000000e+00 : f32
    %75 = vector.broadcast %cst_35 : f32 to vector<8x96xf32>
    %76 = arith.addf %75, %74 : vector<8x96xf32>
    %77 = arith.divf %75, %76 : vector<8x96xf32>
    %78 = vector.extract_strided_slice %71 {offsets = [0, 96], sizes = [8, 32], strides = [1, 1]} : vector<8x128xf32> to vector<8x32xf32>
    %79 = math.tanh %78 : vector<8x32xf32>
    %80 = vector.extract_strided_slice %77 {offsets = [0, 0], sizes = [8, 32], strides = [1, 1]} : vector<8x96xf32> to vector<8x32xf32>
    %81 = vector.extract_strided_slice %77 {offsets = [0, 32], sizes = [8, 32], strides = [1, 1]} : vector<8x96xf32> to vector<8x32xf32>
    %82 = vector.extract_strided_slice %77 {offsets = [0, 64], sizes = [8, 32], strides = [1, 1]} : vector<8x96xf32> to vector<8x32xf32>
    %83 = arith.mulf %81, %68 : vector<8x32xf32>
    %84 = arith.mulf %80, %79 : vector<8x32xf32>
    %85 = arith.addf %83, %84 : vector<8x32xf32>
    %86 = math.tanh %85 : vector<8x32xf32>
    %87 = arith.mulf %82, %86 : vector<8x32xf32>
    %c0_36 = arith.constant 0 : index
    %c0_37 = arith.constant 0 : index
    %88 = vector.load %arg11[%c0_36, %c0_37] : memref<64x32xf32, #tpu.memory_space<vmem>>, vector<8x32xf32>
    tpu.vector_store %arg11[%c0_36, %c0_37], %87 {strides = array<i32>} : memref<64x32xf32, #tpu.memory_space<vmem>>, vector<8x32xf32>,
    %c8_38 = arith.constant 8 : index
    %c0_39 = arith.constant 0 : index
    %89 = vector.load %arg10[%c8_38, %c0_39] : memref<64x128xf32, #tpu.memory_space<vmem>>, vector<8x128xf32>
    %cst_40 = arith.constant dense<0.000000e+00> : vector<8x128xf32>
    %90 = tpu.matmul %87, %66, %cst_40 {dimension_numbers = #tpu.dot_dimension_numbers<[1], [0], [0], [1], [0, 0, 1, 1], [], []>} : vector<8x32xf32>, vector<32x128xf32>, vector<8x128xf32> -> vector<8x128xf32>
    %91 = arith.addf %89, %90 : vector<8x128xf32>
    %92 = vector.extract_strided_slice %91 {offsets = [0, 0], sizes = [8, 96], strides = [1, 1]} : vector<8x128xf32> to vector<8x96xf32>
    %93 = arith.negf %92 : vector<8x96xf32>
    %94 = math.exp %93 : vector<8x96xf32>
    %cst_41 = arith.constant 1.000000e+00 : f32
    %95 = vector.broadcast %cst_41 : f32 to vector<8x96xf32>
    %96 = arith.addf %95, %94 : vector<8x96xf32>
    %97 = arith.divf %95, %96 : vector<8x96xf32>
    %98 = vector.extract_strided_slice %91 {offsets = [0, 96], sizes = [8, 32], strides = [1, 1]} : vector<8x128xf32> to vector<8x32xf32>
    %99 = math.tanh %98 : vector<8x32xf32>
    %100 = vector.extract_strided_slice %97 {offsets = [0, 0], sizes = [8, 32], strides = [1, 1]} : vector<8x96xf32> to vector<8x32xf32>
    %101 = vector.extract_strided_slice %97 {offsets = [0, 32], sizes = [8, 32], strides = [1, 1]} : vector<8x96xf32> to vector<8x32xf32>
    %102 = vector.extract_strided_slice %97 {offsets = [0, 64], sizes = [8, 32], strides = [1, 1]} : vector<8x96xf32> to vector<8x32xf32>
    %103 = arith.mulf %101, %85 : vector<8x32xf32>
    %104 = arith.mulf %100, %99 : vector<8x32xf32>
    %105 = arith.addf %103, %104 : vector<8x32xf32>
    %106 = math.tanh %105 : vector<8x32xf32>
    %107 = arith.mulf %102, %106 : vector<8x32xf32>
    %c8_42 = arith.constant 8 : index
    %c0_43 = arith.constant 0 : index
    %108 = vector.load %arg11[%c8_42, %c0_43] : memref<64x32xf32, #tpu.memory_space<vmem>>, vector<8x32xf32>
    tpu.vector_store %arg11[%c8_42, %c0_43], %107 {strides = array<i32>} : memref<64x32xf32, #tpu.memory_space<vmem>>, vector<8x32xf32>,
    %c16_44 = arith.constant 16 : index
    %c0_45 = arith.constant 0 : index
    %109 = vector.load %arg10[%c16_44, %c0_45] : memref<64x128xf32, #tpu.memory_space<vmem>>, vector<8x128xf32>
    %cst_46 = arith.constant dense<0.000000e+00> : vector<8x128xf32>
    %110 = tpu.matmul %107, %66, %cst_46 {dimension_numbers = #tpu.dot_dimension_numbers<[1], [0], [0], [1], [0, 0, 1, 1], [], []>} : vector<8x32xf32>, vector<32x128xf32>, vector<8x128xf32> -> vector<8x128xf32>
    %111 = arith.addf %109, %110 : vector<8x128xf32>
    %112 = vector.extract_strided_slice %111 {offsets = [0, 0], sizes = [8, 96], strides = [1, 1]} : vector<8x128xf32> to vector<8x96xf32>
    %113 = arith.negf %112 : vector<8x96xf32>
    %114 = math.exp %113 : vector<8x96xf32>
    %cst_47 = arith.constant 1.000000e+00 : f32
    %115 = vector.broadcast %cst_47 : f32 to vector<8x96xf32>
    %116 = arith.addf %115, %114 : vector<8x96xf32>
    %117 = arith.divf %115, %116 : vector<8x96xf32>
    %118 = vector.extract_strided_slice %111 {offsets = [0, 96], sizes = [8, 32], strides = [1, 1]} : vector<8x128xf32> to vector<8x32xf32>
    %119 = math.tanh %118 : vector<8x32xf32>
    %120 = vector.extract_strided_slice %117 {offsets = [0, 0], sizes = [8, 32], strides = [1, 1]} : vector<8x96xf32> to vector<8x32xf32>
    %121 = vector.extract_strided_slice %117 {offsets = [0, 32], sizes = [8, 32], strides = [1, 1]} : vector<8x96xf32> to vector<8x32xf32>
    %122 = vector.extract_strided_slice %117 {offsets = [0, 64], sizes = [8, 32], strides = [1, 1]} : vector<8x96xf32> to vector<8x32xf32>
    %123 = arith.mulf %121, %105 : vector<8x32xf32>
    %124 = arith.mulf %120, %119 : vector<8x32xf32>
    %125 = arith.addf %123, %124 : vector<8x32xf32>
    %126 = math.tanh %125 : vector<8x32xf32>
    %127 = arith.mulf %122, %126 : vector<8x32xf32>
    %c16_48 = arith.constant 16 : index
    %c0_49 = arith.constant 0 : index
    %128 = vector.load %arg11[%c16_48, %c0_49] : memref<64x32xf32, #tpu.memory_space<vmem>>, vector<8x32xf32>
    tpu.vector_store %arg11[%c16_48, %c0_49], %127 {strides = array<i32>} : memref<64x32xf32, #tpu.memory_space<vmem>>, vector<8x32xf32>,
    %c24_50 = arith.constant 24 : index
    %c0_51 = arith.constant 0 : index
    %129 = vector.load %arg10[%c24_50, %c0_51] : memref<64x128xf32, #tpu.memory_space<vmem>>, vector<8x128xf32>
    %cst_52 = arith.constant dense<0.000000e+00> : vector<8x128xf32>
    %130 = tpu.matmul %127, %66, %cst_52 {dimension_numbers = #tpu.dot_dimension_numbers<[1], [0], [0], [1], [0, 0, 1, 1], [], []>} : vector<8x32xf32>, vector<32x128xf32>, vector<8x128xf32> -> vector<8x128xf32>
    %131 = arith.addf %129, %130 : vector<8x128xf32>
    %132 = vector.extract_strided_slice %131 {offsets = [0, 0], sizes = [8, 96], strides = [1, 1]} : vector<8x128xf32> to vector<8x96xf32>
    %133 = arith.negf %132 : vector<8x96xf32>
    %134 = math.exp %133 : vector<8x96xf32>
    %cst_53 = arith.constant 1.000000e+00 : f32
    %135 = vector.broadcast %cst_53 : f32 to vector<8x96xf32>
    %136 = arith.addf %135, %134 : vector<8x96xf32>
    %137 = arith.divf %135, %136 : vector<8x96xf32>
    %138 = vector.extract_strided_slice %131 {offsets = [0, 96], sizes = [8, 32], strides = [1, 1]} : vector<8x128xf32> to vector<8x32xf32>
    %139 = math.tanh %138 : vector<8x32xf32>
    %140 = vector.extract_strided_slice %137 {offsets = [0, 0], sizes = [8, 32], strides = [1, 1]} : vector<8x96xf32> to vector<8x32xf32>
    %141 = vector.extract_strided_slice %137 {offsets = [0, 32], sizes = [8, 32], strides = [1, 1]} : vector<8x96xf32> to vector<8x32xf32>
    %142 = vector.extract_strided_slice %137 {offsets = [0, 64], sizes = [8, 32], strides = [1, 1]} : vector<8x96xf32> to vector<8x32xf32>
    %143 = arith.mulf %141, %125 : vector<8x32xf32>
    %144 = arith.mulf %140, %139 : vector<8x32xf32>
    %145 = arith.addf %143, %144 : vector<8x32xf32>
    %146 = math.tanh %145 : vector<8x32xf32>
    %147 = arith.mulf %142, %146 : vector<8x32xf32>
    %c24_54 = arith.constant 24 : index
    %c0_55 = arith.constant 0 : index
    %148 = vector.load %arg11[%c24_54, %c0_55] : memref<64x32xf32, #tpu.memory_space<vmem>>, vector<8x32xf32>
    tpu.vector_store %arg11[%c24_54, %c0_55], %147 {strides = array<i32>} : memref<64x32xf32, #tpu.memory_space<vmem>>, vector<8x32xf32>,
    %c32_56 = arith.constant 32 : index
    %c0_57 = arith.constant 0 : index
    %149 = vector.load %arg10[%c32_56, %c0_57] : memref<64x128xf32, #tpu.memory_space<vmem>>, vector<8x128xf32>
    %cst_58 = arith.constant dense<0.000000e+00> : vector<8x128xf32>
    %150 = tpu.matmul %147, %66, %cst_58 {dimension_numbers = #tpu.dot_dimension_numbers<[1], [0], [0], [1], [0, 0, 1, 1], [], []>} : vector<8x32xf32>, vector<32x128xf32>, vector<8x128xf32> -> vector<8x128xf32>
    %151 = arith.addf %149, %150 : vector<8x128xf32>
    %152 = vector.extract_strided_slice %151 {offsets = [0, 0], sizes = [8, 96], strides = [1, 1]} : vector<8x128xf32> to vector<8x96xf32>
    %153 = arith.negf %152 : vector<8x96xf32>
    %154 = math.exp %153 : vector<8x96xf32>
    %cst_59 = arith.constant 1.000000e+00 : f32
    %155 = vector.broadcast %cst_59 : f32 to vector<8x96xf32>
    %156 = arith.addf %155, %154 : vector<8x96xf32>
    %157 = arith.divf %155, %156 : vector<8x96xf32>
    %158 = vector.extract_strided_slice %151 {offsets = [0, 96], sizes = [8, 32], strides = [1, 1]} : vector<8x128xf32> to vector<8x32xf32>
    %159 = math.tanh %158 : vector<8x32xf32>
    %160 = vector.extract_strided_slice %157 {offsets = [0, 0], sizes = [8, 32], strides = [1, 1]} : vector<8x96xf32> to vector<8x32xf32>
    %161 = vector.extract_strided_slice %157 {offsets = [0, 32], sizes = [8, 32], strides = [1, 1]} : vector<8x96xf32> to vector<8x32xf32>
    %162 = vector.extract_strided_slice %157 {offsets = [0, 64], sizes = [8, 32], strides = [1, 1]} : vector<8x96xf32> to vector<8x32xf32>
    %163 = arith.mulf %161, %145 : vector<8x32xf32>
    %164 = arith.mulf %160, %159 : vector<8x32xf32>
    %165 = arith.addf %163, %164 : vector<8x32xf32>
    %166 = math.tanh %165 : vector<8x32xf32>
    %167 = arith.mulf %162, %166 : vector<8x32xf32>
    %c32_60 = arith.constant 32 : index
    %c0_61 = arith.constant 0 : index
    %168 = vector.load %arg11[%c32_60, %c0_61] : memref<64x32xf32, #tpu.memory_space<vmem>>, vector<8x32xf32>
    tpu.vector_store %arg11[%c32_60, %c0_61], %167 {strides = array<i32>} : memref<64x32xf32, #tpu.memory_space<vmem>>, vector<8x32xf32>,
    %c40_62 = arith.constant 40 : index
    %c0_63 = arith.constant 0 : index
    %169 = vector.load %arg10[%c40_62, %c0_63] : memref<64x128xf32, #tpu.memory_space<vmem>>, vector<8x128xf32>
    %cst_64 = arith.constant dense<0.000000e+00> : vector<8x128xf32>
    %170 = tpu.matmul %167, %66, %cst_64 {dimension_numbers = #tpu.dot_dimension_numbers<[1], [0], [0], [1], [0, 0, 1, 1], [], []>} : vector<8x32xf32>, vector<32x128xf32>, vector<8x128xf32> -> vector<8x128xf32>
    %171 = arith.addf %169, %170 : vector<8x128xf32>
    %172 = vector.extract_strided_slice %171 {offsets = [0, 0], sizes = [8, 96], strides = [1, 1]} : vector<8x128xf32> to vector<8x96xf32>
    %173 = arith.negf %172 : vector<8x96xf32>
    %174 = math.exp %173 : vector<8x96xf32>
    %cst_65 = arith.constant 1.000000e+00 : f32
    %175 = vector.broadcast %cst_65 : f32 to vector<8x96xf32>
    %176 = arith.addf %175, %174 : vector<8x96xf32>
    %177 = arith.divf %175, %176 : vector<8x96xf32>
    %178 = vector.extract_strided_slice %171 {offsets = [0, 96], sizes = [8, 32], strides = [1, 1]} : vector<8x128xf32> to vector<8x32xf32>
    %179 = math.tanh %178 : vector<8x32xf32>
    %180 = vector.extract_strided_slice %177 {offsets = [0, 0], sizes = [8, 32], strides = [1, 1]} : vector<8x96xf32> to vector<8x32xf32>
    %181 = vector.extract_strided_slice %177 {offsets = [0, 32], sizes = [8, 32], strides = [1, 1]} : vector<8x96xf32> to vector<8x32xf32>
    %182 = vector.extract_strided_slice %177 {offsets = [0, 64], sizes = [8, 32], strides = [1, 1]} : vector<8x96xf32> to vector<8x32xf32>
    %183 = arith.mulf %181, %165 : vector<8x32xf32>
    %184 = arith.mulf %180, %179 : vector<8x32xf32>
    %185 = arith.addf %183, %184 : vector<8x32xf32>
    %186 = math.tanh %185 : vector<8x32xf32>
    %187 = arith.mulf %182, %186 : vector<8x32xf32>
    %c40_66 = arith.constant 40 : index
    %c0_67 = arith.constant 0 : index
    %188 = vector.load %arg11[%c40_66, %c0_67] : memref<64x32xf32, #tpu.memory_space<vmem>>, vector<8x32xf32>
    tpu.vector_store %arg11[%c40_66, %c0_67], %187 {strides = array<i32>} : memref<64x32xf32, #tpu.memory_space<vmem>>, vector<8x32xf32>,
    %c48_68 = arith.constant 48 : index
    %c0_69 = arith.constant 0 : index
    %189 = vector.load %arg10[%c48_68, %c0_69] : memref<64x128xf32, #tpu.memory_space<vmem>>, vector<8x128xf32>
    %cst_70 = arith.constant dense<0.000000e+00> : vector<8x128xf32>
    %190 = tpu.matmul %187, %66, %cst_70 {dimension_numbers = #tpu.dot_dimension_numbers<[1], [0], [0], [1], [0, 0, 1, 1], [], []>} : vector<8x32xf32>, vector<32x128xf32>, vector<8x128xf32> -> vector<8x128xf32>
    %191 = arith.addf %189, %190 : vector<8x128xf32>
    %192 = vector.extract_strided_slice %191 {offsets = [0, 0], sizes = [8, 96], strides = [1, 1]} : vector<8x128xf32> to vector<8x96xf32>
    %193 = arith.negf %192 : vector<8x96xf32>
    %194 = math.exp %193 : vector<8x96xf32>
    %cst_71 = arith.constant 1.000000e+00 : f32
    %195 = vector.broadcast %cst_71 : f32 to vector<8x96xf32>
    %196 = arith.addf %195, %194 : vector<8x96xf32>
    %197 = arith.divf %195, %196 : vector<8x96xf32>
    %198 = vector.extract_strided_slice %191 {offsets = [0, 96], sizes = [8, 32], strides = [1, 1]} : vector<8x128xf32> to vector<8x32xf32>
    %199 = math.tanh %198 : vector<8x32xf32>
    %200 = vector.extract_strided_slice %197 {offsets = [0, 0], sizes = [8, 32], strides = [1, 1]} : vector<8x96xf32> to vector<8x32xf32>
    %201 = vector.extract_strided_slice %197 {offsets = [0, 32], sizes = [8, 32], strides = [1, 1]} : vector<8x96xf32> to vector<8x32xf32>
    %202 = vector.extract_strided_slice %197 {offsets = [0, 64], sizes = [8, 32], strides = [1, 1]} : vector<8x96xf32> to vector<8x32xf32>
    %203 = arith.mulf %201, %185 : vector<8x32xf32>
    %204 = arith.mulf %200, %199 : vector<8x32xf32>
    %205 = arith.addf %203, %204 : vector<8x32xf32>
    %206 = math.tanh %205 : vector<8x32xf32>
    %207 = arith.mulf %202, %206 : vector<8x32xf32>
    %c48_72 = arith.constant 48 : index
    %c0_73 = arith.constant 0 : index
    %208 = vector.load %arg11[%c48_72, %c0_73] : memref<64x32xf32, #tpu.memory_space<vmem>>, vector<8x32xf32>
    tpu.vector_store %arg11[%c48_72, %c0_73], %207 {strides = array<i32>} : memref<64x32xf32, #tpu.memory_space<vmem>>, vector<8x32xf32>,
    %c56_74 = arith.constant 56 : index
    %c0_75 = arith.constant 0 : index
    %209 = vector.load %arg10[%c56_74, %c0_75] : memref<64x128xf32, #tpu.memory_space<vmem>>, vector<8x128xf32>
    %cst_76 = arith.constant dense<0.000000e+00> : vector<8x128xf32>
    %210 = tpu.matmul %207, %66, %cst_76 {dimension_numbers = #tpu.dot_dimension_numbers<[1], [0], [0], [1], [0, 0, 1, 1], [], []>} : vector<8x32xf32>, vector<32x128xf32>, vector<8x128xf32> -> vector<8x128xf32>
    %211 = arith.addf %209, %210 : vector<8x128xf32>
    %212 = vector.extract_strided_slice %211 {offsets = [0, 0], sizes = [8, 96], strides = [1, 1]} : vector<8x128xf32> to vector<8x96xf32>
    %213 = arith.negf %212 : vector<8x96xf32>
    %214 = math.exp %213 : vector<8x96xf32>
    %cst_77 = arith.constant 1.000000e+00 : f32
    %215 = vector.broadcast %cst_77 : f32 to vector<8x96xf32>
    %216 = arith.addf %215, %214 : vector<8x96xf32>
    %217 = arith.divf %215, %216 : vector<8x96xf32>
    %218 = vector.extract_strided_slice %211 {offsets = [0, 96], sizes = [8, 32], strides = [1, 1]} : vector<8x128xf32> to vector<8x32xf32>
    %219 = math.tanh %218 : vector<8x32xf32>
    %220 = vector.extract_strided_slice %217 {offsets = [0, 0], sizes = [8, 32], strides = [1, 1]} : vector<8x96xf32> to vector<8x32xf32>
    %221 = vector.extract_strided_slice %217 {offsets = [0, 32], sizes = [8, 32], strides = [1, 1]} : vector<8x96xf32> to vector<8x32xf32>
    %222 = vector.extract_strided_slice %217 {offsets = [0, 64], sizes = [8, 32], strides = [1, 1]} : vector<8x96xf32> to vector<8x32xf32>
    %223 = arith.mulf %221, %205 : vector<8x32xf32>
    %224 = arith.mulf %220, %219 : vector<8x32xf32>
    %225 = arith.addf %223, %224 : vector<8x32xf32>
    %226 = math.tanh %225 : vector<8x32xf32>
    %227 = arith.mulf %222, %226 : vector<8x32xf32>
    %c56_78 = arith.constant 56 : index
    %c0_79 = arith.constant 0 : index
    %228 = vector.load %arg11[%c56_78, %c0_79] : memref<64x32xf32, #tpu.memory_space<vmem>>, vector<8x32xf32>
    tpu.vector_store %arg11[%c56_78, %c0_79], %227 {strides = array<i32>} : memref<64x32xf32, #tpu.memory_space<vmem>>, vector<8x32xf32>,
    %c0_80 = arith.constant 0 : index
    %c0_81 = arith.constant 0 : index
    %229 = vector.load %arg5[%c0_80, %c0_81] : memref<32x128xf32, #tpu.memory_space<vmem>>, vector<32x128xf32>
    %c0_82 = arith.constant 0 : index
    %c0_83 = arith.constant 0 : index
    %230 = vector.load %arg4[%c0_82, %c0_83] : memref<32x128xf32, #tpu.memory_space<vmem>>, vector<32x128xf32>
    %c0_84 = arith.constant 0 : index
    %c0_85 = arith.constant 0 : index
    %231 = vector.load %arg6[%c0_84, %c0_85] : memref<1x128xf32, #tpu.memory_space<vmem>>, vector<1x128xf32>
    %c0_86 = arith.constant 0 : index
    %c0_87 = arith.constant 0 : index
    %232 = vector.load %arg11[%c0_86, %c0_87] : memref<64x32xf32, #tpu.memory_space<vmem>>, vector<64x32xf32>
    %cst_88 = arith.constant dense<0.000000e+00> : vector<64x128xf32>
    %233 = tpu.matmul %232, %230, %cst_88 {dimension_numbers = #tpu.dot_dimension_numbers<[1], [0], [0], [1], [0, 0, 1, 1], [], []>} : vector<64x32xf32>, vector<32x128xf32>, vector<64x128xf32> -> vector<64x128xf32>
    %234 = vector.broadcast %231 : vector<1x128xf32> to vector<64x128xf32>
    %235 = arith.addf %233, %234 : vector<64x128xf32>
    %c0_89 = arith.constant 0 : index
    %c0_90 = arith.constant 0 : index
    %236 = vector.load %arg10[%c0_89, %c0_90] : memref<64x128xf32, #tpu.memory_space<vmem>>, vector<64x128xf32>
    tpu.vector_store %arg10[%c0_89, %c0_90], %235 {strides = array<i32>} : memref<64x128xf32, #tpu.memory_space<vmem>>, vector<64x128xf32>,
    %cst_91 = arith.constant 0.000000e+00 : f32
    %237 = vector.broadcast %cst_91 : f32 to vector<8x32xf32>
    %cst_92 = arith.constant 0.000000e+00 : f32
    %238 = vector.broadcast %cst_92 : f32 to vector<8x32xf32>
    %c0_93 = arith.constant 0 : index
    %c0_94 = arith.constant 0 : index
    %239 = vector.load %arg10[%c0_93, %c0_94] : memref<64x128xf32, #tpu.memory_space<vmem>>, vector<8x128xf32>
    %cst_95 = arith.constant dense<0.000000e+00> : vector<8x128xf32>
    %240 = tpu.matmul %237, %229, %cst_95 {dimension_numbers = #tpu.dot_dimension_numbers<[1], [0], [0], [1], [0, 0, 1, 1], [], []>} : vector<8x32xf32>, vector<32x128xf32>, vector<8x128xf32> -> vector<8x128xf32>
    %241 = arith.addf %239, %240 : vector<8x128xf32>
    %242 = vector.extract_strided_slice %241 {offsets = [0, 0], sizes = [8, 96], strides = [1, 1]} : vector<8x128xf32> to vector<8x96xf32>
    %243 = arith.negf %242 : vector<8x96xf32>
    %244 = math.exp %243 : vector<8x96xf32>
    %cst_96 = arith.constant 1.000000e+00 : f32
    %245 = vector.broadcast %cst_96 : f32 to vector<8x96xf32>
    %246 = arith.addf %245, %244 : vector<8x96xf32>
    %247 = arith.divf %245, %246 : vector<8x96xf32>
    %248 = vector.extract_strided_slice %241 {offsets = [0, 96], sizes = [8, 32], strides = [1, 1]} : vector<8x128xf32> to vector<8x32xf32>
    %249 = math.tanh %248 : vector<8x32xf32>
    %250 = vector.extract_strided_slice %247 {offsets = [0, 0], sizes = [8, 32], strides = [1, 1]} : vector<8x96xf32> to vector<8x32xf32>
    %251 = vector.extract_strided_slice %247 {offsets = [0, 32], sizes = [8, 32], strides = [1, 1]} : vector<8x96xf32> to vector<8x32xf32>
    %252 = vector.extract_strided_slice %247 {offsets = [0, 64], sizes = [8, 32], strides = [1, 1]} : vector<8x96xf32> to vector<8x32xf32>
    %253 = arith.mulf %251, %238 : vector<8x32xf32>
    %254 = arith.mulf %250, %249 : vector<8x32xf32>
    %255 = arith.addf %253, %254 : vector<8x32xf32>
    %256 = math.tanh %255 : vector<8x32xf32>
    %257 = arith.mulf %252, %256 : vector<8x32xf32>
    %c8_97 = arith.constant 8 : index
    %c0_98 = arith.constant 0 : index
    %258 = vector.load %arg10[%c8_97, %c0_98] : memref<64x128xf32, #tpu.memory_space<vmem>>, vector<8x128xf32>
    %cst_99 = arith.constant dense<0.000000e+00> : vector<8x128xf32>
    %259 = tpu.matmul %257, %229, %cst_99 {dimension_numbers = #tpu.dot_dimension_numbers<[1], [0], [0], [1], [0, 0, 1, 1], [], []>} : vector<8x32xf32>, vector<32x128xf32>, vector<8x128xf32> -> vector<8x128xf32>
    %260 = arith.addf %258, %259 : vector<8x128xf32>
    %261 = vector.extract_strided_slice %260 {offsets = [0, 0], sizes = [8, 96], strides = [1, 1]} : vector<8x128xf32> to vector<8x96xf32>
    %262 = arith.negf %261 : vector<8x96xf32>
    %263 = math.exp %262 : vector<8x96xf32>
    %cst_100 = arith.constant 1.000000e+00 : f32
    %264 = vector.broadcast %cst_100 : f32 to vector<8x96xf32>
    %265 = arith.addf %264, %263 : vector<8x96xf32>
    %266 = arith.divf %264, %265 : vector<8x96xf32>
    %267 = vector.extract_strided_slice %260 {offsets = [0, 96], sizes = [8, 32], strides = [1, 1]} : vector<8x128xf32> to vector<8x32xf32>
    %268 = math.tanh %267 : vector<8x32xf32>
    %269 = vector.extract_strided_slice %266 {offsets = [0, 0], sizes = [8, 32], strides = [1, 1]} : vector<8x96xf32> to vector<8x32xf32>
    %270 = vector.extract_strided_slice %266 {offsets = [0, 32], sizes = [8, 32], strides = [1, 1]} : vector<8x96xf32> to vector<8x32xf32>
    %271 = vector.extract_strided_slice %266 {offsets = [0, 64], sizes = [8, 32], strides = [1, 1]} : vector<8x96xf32> to vector<8x32xf32>
    %272 = arith.mulf %270, %255 : vector<8x32xf32>
    %273 = arith.mulf %269, %268 : vector<8x32xf32>
    %274 = arith.addf %272, %273 : vector<8x32xf32>
    %275 = math.tanh %274 : vector<8x32xf32>
    %276 = arith.mulf %271, %275 : vector<8x32xf32>
    %c16_101 = arith.constant 16 : index
    %c0_102 = arith.constant 0 : index
    %277 = vector.load %arg10[%c16_101, %c0_102] : memref<64x128xf32, #tpu.memory_space<vmem>>, vector<8x128xf32>
    %cst_103 = arith.constant dense<0.000000e+00> : vector<8x128xf32>
    %278 = tpu.matmul %276, %229, %cst_103 {dimension_numbers = #tpu.dot_dimension_numbers<[1], [0], [0], [1], [0, 0, 1, 1], [], []>} : vector<8x32xf32>, vector<32x128xf32>, vector<8x128xf32> -> vector<8x128xf32>
    %279 = arith.addf %277, %278 : vector<8x128xf32>
    %280 = vector.extract_strided_slice %279 {offsets = [0, 0], sizes = [8, 96], strides = [1, 1]} : vector<8x128xf32> to vector<8x96xf32>
    %281 = arith.negf %280 : vector<8x96xf32>
    %282 = math.exp %281 : vector<8x96xf32>
    %cst_104 = arith.constant 1.000000e+00 : f32
    %283 = vector.broadcast %cst_104 : f32 to vector<8x96xf32>
    %284 = arith.addf %283, %282 : vector<8x96xf32>
    %285 = arith.divf %283, %284 : vector<8x96xf32>
    %286 = vector.extract_strided_slice %279 {offsets = [0, 96], sizes = [8, 32], strides = [1, 1]} : vector<8x128xf32> to vector<8x32xf32>
    %287 = math.tanh %286 : vector<8x32xf32>
    %288 = vector.extract_strided_slice %285 {offsets = [0, 0], sizes = [8, 32], strides = [1, 1]} : vector<8x96xf32> to vector<8x32xf32>
    %289 = vector.extract_strided_slice %285 {offsets = [0, 32], sizes = [8, 32], strides = [1, 1]} : vector<8x96xf32> to vector<8x32xf32>
    %290 = vector.extract_strided_slice %285 {offsets = [0, 64], sizes = [8, 32], strides = [1, 1]} : vector<8x96xf32> to vector<8x32xf32>
    %291 = arith.mulf %289, %274 : vector<8x32xf32>
    %292 = arith.mulf %288, %287 : vector<8x32xf32>
    %293 = arith.addf %291, %292 : vector<8x32xf32>
    %294 = math.tanh %293 : vector<8x32xf32>
    %295 = arith.mulf %290, %294 : vector<8x32xf32>
    %c24_105 = arith.constant 24 : index
    %c0_106 = arith.constant 0 : index
    %296 = vector.load %arg10[%c24_105, %c0_106] : memref<64x128xf32, #tpu.memory_space<vmem>>, vector<8x128xf32>
    %cst_107 = arith.constant dense<0.000000e+00> : vector<8x128xf32>
    %297 = tpu.matmul %295, %229, %cst_107 {dimension_numbers = #tpu.dot_dimension_numbers<[1], [0], [0], [1], [0, 0, 1, 1], [], []>} : vector<8x32xf32>, vector<32x128xf32>, vector<8x128xf32> -> vector<8x128xf32>
    %298 = arith.addf %296, %297 : vector<8x128xf32>
    %299 = vector.extract_strided_slice %298 {offsets = [0, 0], sizes = [8, 96], strides = [1, 1]} : vector<8x128xf32> to vector<8x96xf32>
    %300 = arith.negf %299 : vector<8x96xf32>
    %301 = math.exp %300 : vector<8x96xf32>
    %cst_108 = arith.constant 1.000000e+00 : f32
    %302 = vector.broadcast %cst_108 : f32 to vector<8x96xf32>
    %303 = arith.addf %302, %301 : vector<8x96xf32>
    %304 = arith.divf %302, %303 : vector<8x96xf32>
    %305 = vector.extract_strided_slice %298 {offsets = [0, 96], sizes = [8, 32], strides = [1, 1]} : vector<8x128xf32> to vector<8x32xf32>
    %306 = math.tanh %305 : vector<8x32xf32>
    %307 = vector.extract_strided_slice %304 {offsets = [0, 0], sizes = [8, 32], strides = [1, 1]} : vector<8x96xf32> to vector<8x32xf32>
    %308 = vector.extract_strided_slice %304 {offsets = [0, 32], sizes = [8, 32], strides = [1, 1]} : vector<8x96xf32> to vector<8x32xf32>
    %309 = vector.extract_strided_slice %304 {offsets = [0, 64], sizes = [8, 32], strides = [1, 1]} : vector<8x96xf32> to vector<8x32xf32>
    %310 = arith.mulf %308, %293 : vector<8x32xf32>
    %311 = arith.mulf %307, %306 : vector<8x32xf32>
    %312 = arith.addf %310, %311 : vector<8x32xf32>
    %313 = math.tanh %312 : vector<8x32xf32>
    %314 = arith.mulf %309, %313 : vector<8x32xf32>
    %c32_109 = arith.constant 32 : index
    %c0_110 = arith.constant 0 : index
    %315 = vector.load %arg10[%c32_109, %c0_110] : memref<64x128xf32, #tpu.memory_space<vmem>>, vector<8x128xf32>
    %cst_111 = arith.constant dense<0.000000e+00> : vector<8x128xf32>
    %316 = tpu.matmul %314, %229, %cst_111 {dimension_numbers = #tpu.dot_dimension_numbers<[1], [0], [0], [1], [0, 0, 1, 1], [], []>} : vector<8x32xf32>, vector<32x128xf32>, vector<8x128xf32> -> vector<8x128xf32>
    %317 = arith.addf %315, %316 : vector<8x128xf32>
    %318 = vector.extract_strided_slice %317 {offsets = [0, 0], sizes = [8, 96], strides = [1, 1]} : vector<8x128xf32> to vector<8x96xf32>
    %319 = arith.negf %318 : vector<8x96xf32>
    %320 = math.exp %319 : vector<8x96xf32>
    %cst_112 = arith.constant 1.000000e+00 : f32
    %321 = vector.broadcast %cst_112 : f32 to vector<8x96xf32>
    %322 = arith.addf %321, %320 : vector<8x96xf32>
    %323 = arith.divf %321, %322 : vector<8x96xf32>
    %324 = vector.extract_strided_slice %317 {offsets = [0, 96], sizes = [8, 32], strides = [1, 1]} : vector<8x128xf32> to vector<8x32xf32>
    %325 = math.tanh %324 : vector<8x32xf32>
    %326 = vector.extract_strided_slice %323 {offsets = [0, 0], sizes = [8, 32], strides = [1, 1]} : vector<8x96xf32> to vector<8x32xf32>
    %327 = vector.extract_strided_slice %323 {offsets = [0, 32], sizes = [8, 32], strides = [1, 1]} : vector<8x96xf32> to vector<8x32xf32>
    %328 = vector.extract_strided_slice %323 {offsets = [0, 64], sizes = [8, 32], strides = [1, 1]} : vector<8x96xf32> to vector<8x32xf32>
    %329 = arith.mulf %327, %312 : vector<8x32xf32>
    %330 = arith.mulf %326, %325 : vector<8x32xf32>
    %331 = arith.addf %329, %330 : vector<8x32xf32>
    %332 = math.tanh %331 : vector<8x32xf32>
    %333 = arith.mulf %328, %332 : vector<8x32xf32>
    %c40_113 = arith.constant 40 : index
    %c0_114 = arith.constant 0 : index
    %334 = vector.load %arg10[%c40_113, %c0_114] : memref<64x128xf32, #tpu.memory_space<vmem>>, vector<8x128xf32>
    %cst_115 = arith.constant dense<0.000000e+00> : vector<8x128xf32>
    %335 = tpu.matmul %333, %229, %cst_115 {dimension_numbers = #tpu.dot_dimension_numbers<[1], [0], [0], [1], [0, 0, 1, 1], [], []>} : vector<8x32xf32>, vector<32x128xf32>, vector<8x128xf32> -> vector<8x128xf32>
    %336 = arith.addf %334, %335 : vector<8x128xf32>
    %337 = vector.extract_strided_slice %336 {offsets = [0, 0], sizes = [8, 96], strides = [1, 1]} : vector<8x128xf32> to vector<8x96xf32>
    %338 = arith.negf %337 : vector<8x96xf32>
    %339 = math.exp %338 : vector<8x96xf32>
    %cst_116 = arith.constant 1.000000e+00 : f32
    %340 = vector.broadcast %cst_116 : f32 to vector<8x96xf32>
    %341 = arith.addf %340, %339 : vector<8x96xf32>
    %342 = arith.divf %340, %341 : vector<8x96xf32>
    %343 = vector.extract_strided_slice %336 {offsets = [0, 96], sizes = [8, 32], strides = [1, 1]} : vector<8x128xf32> to vector<8x32xf32>
    %344 = math.tanh %343 : vector<8x32xf32>
    %345 = vector.extract_strided_slice %342 {offsets = [0, 0], sizes = [8, 32], strides = [1, 1]} : vector<8x96xf32> to vector<8x32xf32>
    %346 = vector.extract_strided_slice %342 {offsets = [0, 32], sizes = [8, 32], strides = [1, 1]} : vector<8x96xf32> to vector<8x32xf32>
    %347 = vector.extract_strided_slice %342 {offsets = [0, 64], sizes = [8, 32], strides = [1, 1]} : vector<8x96xf32> to vector<8x32xf32>
    %348 = arith.mulf %346, %331 : vector<8x32xf32>
    %349 = arith.mulf %345, %344 : vector<8x32xf32>
    %350 = arith.addf %348, %349 : vector<8x32xf32>
    %351 = math.tanh %350 : vector<8x32xf32>
    %352 = arith.mulf %347, %351 : vector<8x32xf32>
    %c48_117 = arith.constant 48 : index
    %c0_118 = arith.constant 0 : index
    %353 = vector.load %arg10[%c48_117, %c0_118] : memref<64x128xf32, #tpu.memory_space<vmem>>, vector<8x128xf32>
    %cst_119 = arith.constant dense<0.000000e+00> : vector<8x128xf32>
    %354 = tpu.matmul %352, %229, %cst_119 {dimension_numbers = #tpu.dot_dimension_numbers<[1], [0], [0], [1], [0, 0, 1, 1], [], []>} : vector<8x32xf32>, vector<32x128xf32>, vector<8x128xf32> -> vector<8x128xf32>
    %355 = arith.addf %353, %354 : vector<8x128xf32>
    %356 = vector.extract_strided_slice %355 {offsets = [0, 0], sizes = [8, 96], strides = [1, 1]} : vector<8x128xf32> to vector<8x96xf32>
    %357 = arith.negf %356 : vector<8x96xf32>
    %358 = math.exp %357 : vector<8x96xf32>
    %cst_120 = arith.constant 1.000000e+00 : f32
    %359 = vector.broadcast %cst_120 : f32 to vector<8x96xf32>
    %360 = arith.addf %359, %358 : vector<8x96xf32>
    %361 = arith.divf %359, %360 : vector<8x96xf32>
    %362 = vector.extract_strided_slice %355 {offsets = [0, 96], sizes = [8, 32], strides = [1, 1]} : vector<8x128xf32> to vector<8x32xf32>
    %363 = math.tanh %362 : vector<8x32xf32>
    %364 = vector.extract_strided_slice %361 {offsets = [0, 0], sizes = [8, 32], strides = [1, 1]} : vector<8x96xf32> to vector<8x32xf32>
    %365 = vector.extract_strided_slice %361 {offsets = [0, 32], sizes = [8, 32], strides = [1, 1]} : vector<8x96xf32> to vector<8x32xf32>
    %366 = vector.extract_strided_slice %361 {offsets = [0, 64], sizes = [8, 32], strides = [1, 1]} : vector<8x96xf32> to vector<8x32xf32>
    %367 = arith.mulf %365, %350 : vector<8x32xf32>
    %368 = arith.mulf %364, %363 : vector<8x32xf32>
    %369 = arith.addf %367, %368 : vector<8x32xf32>
    %370 = math.tanh %369 : vector<8x32xf32>
    %371 = arith.mulf %366, %370 : vector<8x32xf32>
    %c56_121 = arith.constant 56 : index
    %c0_122 = arith.constant 0 : index
    %372 = vector.load %arg10[%c56_121, %c0_122] : memref<64x128xf32, #tpu.memory_space<vmem>>, vector<8x128xf32>
    %cst_123 = arith.constant dense<0.000000e+00> : vector<8x128xf32>
    %373 = tpu.matmul %371, %229, %cst_123 {dimension_numbers = #tpu.dot_dimension_numbers<[1], [0], [0], [1], [0, 0, 1, 1], [], []>} : vector<8x32xf32>, vector<32x128xf32>, vector<8x128xf32> -> vector<8x128xf32>
    %374 = arith.addf %372, %373 : vector<8x128xf32>
    %375 = vector.extract_strided_slice %374 {offsets = [0, 0], sizes = [8, 96], strides = [1, 1]} : vector<8x128xf32> to vector<8x96xf32>
    %376 = arith.negf %375 : vector<8x96xf32>
    %377 = math.exp %376 : vector<8x96xf32>
    %cst_124 = arith.constant 1.000000e+00 : f32
    %378 = vector.broadcast %cst_124 : f32 to vector<8x96xf32>
    %379 = arith.addf %378, %377 : vector<8x96xf32>
    %380 = arith.divf %378, %379 : vector<8x96xf32>
    %381 = vector.extract_strided_slice %374 {offsets = [0, 96], sizes = [8, 32], strides = [1, 1]} : vector<8x128xf32> to vector<8x32xf32>
    %382 = math.tanh %381 : vector<8x32xf32>
    %383 = vector.extract_strided_slice %380 {offsets = [0, 0], sizes = [8, 32], strides = [1, 1]} : vector<8x96xf32> to vector<8x32xf32>
    %384 = vector.extract_strided_slice %380 {offsets = [0, 32], sizes = [8, 32], strides = [1, 1]} : vector<8x96xf32> to vector<8x32xf32>
    %385 = vector.extract_strided_slice %380 {offsets = [0, 64], sizes = [8, 32], strides = [1, 1]} : vector<8x96xf32> to vector<8x32xf32>
    %386 = arith.mulf %384, %369 : vector<8x32xf32>
    %387 = arith.mulf %383, %382 : vector<8x32xf32>
    %388 = arith.addf %386, %387 : vector<8x32xf32>
    %389 = math.tanh %388 : vector<8x32xf32>
    %390 = arith.mulf %385, %389 : vector<8x32xf32>
    %c0_125 = arith.constant 0 : index
    %c0_126 = arith.constant 0 : index
    %391 = vector.load %arg7[%c0_125, %c0_126] : memref<32x128xf32, #tpu.memory_space<vmem>>, vector<32x128xf32>
    %cst_127 = arith.constant dense<0.000000e+00> : vector<8x128xf32>
    %392 = tpu.matmul %390, %391, %cst_127 {dimension_numbers = #tpu.dot_dimension_numbers<[1], [0], [0], [1], [0, 0, 1, 1], [], []>} : vector<8x32xf32>, vector<32x128xf32>, vector<8x128xf32> -> vector<8x128xf32>
    %c0_128 = arith.constant 0 : index
    %c0_129 = arith.constant 0 : index
    %393 = vector.load %arg8[%c0_128, %c0_129] : memref<1x128xf32, #tpu.memory_space<vmem>>, vector<1x128xf32>
    %394 = vector.broadcast %393 : vector<1x128xf32> to vector<8x128xf32>
    %395 = arith.addf %392, %394 : vector<8x128xf32>
    %c0_130 = arith.constant 0 : index
    %c0_131 = arith.constant 0 : index
    %396 = vector.load %arg9[%c0_130, %c0_131] : memref<8x128xf32, #tpu.memory_space<vmem>>, vector<8x128xf32>
    tpu.vector_store %arg9[%c0_130, %c0_131], %395 {strides = array<i32>} : memref<8x128xf32, #tpu.memory_space<vmem>>, vector<8x128xf32>,
    return
  }
}

</mosaic_0001>

<bundles_post_ra>
// kernel: dl_forward.1
= control target key start
LH: loop header
LB: loop body
LE: loop exit
PB: predicated region body
PF: predicated region fallthrough
CT: control target
= control target key end

     0   :  { %14 = vsyncpa [#allocation5], 0  ;;  %s3211_s0 = inlined_call_operand.vmem [shape: f32[16,4], index: 0, kind: input, shape index: {}]   ;;  %s3212_s1 = inlined_call_operand.hbm [shape: f32[4,128], index: 1, kind: input, shape index: {}]   ;;  %s3213_s2 = inlined_call_operand.vmem [shape: f32[32,128], index: 2, kind: input, shape index: {}]   ;;  %s3214_s3 = inlined_call_operand.vmem [shape: f32[1,128], index: 3, kind: input, shape index: {}]   ;;  %s3215_s4 = inlined_call_operand.hbm [shape: f32[32,128], index: 4, kind: input, shape index: {}]   ;;  %s3216_s5 = inlined_call_operand.hbm [shape: f32[32,128], index: 5, kind: input, shape index: {}]   ;;  %s3217_s6 = inlined_call_operand.vmem [shape: f32[1,128], index: 6, kind: input, shape index: {}]   ;;  %s3218_s7 = inlined_call_operand.hbm [shape: f32[32,128], index: 7, kind: input, shape index: {}]   ;;  %s3219_s8 = inlined_call_operand.vmem [shape: f32[1,128], index: 8, kind: input, shape index: {}]   ;;  %s3220_s9 = inlined_call_operand.vmem [shape: f32[8,128], index: 9, kind: output, shape index: {}]  }
   0x1   :  { %15 = vsyncpa [#allocation7], 0 }
   0x2   :  { %16 = vsyncpa [#allocation10], 0  ;;  %s2780_s30 = smov [#allocation6]   ;;  %s2686_s13 = scalar_lea.hbm %s3215_s4, 512 }
   0x3   :  { %s38_s10 = sshll.u32 %s2780_s30, 4  ;;  %p2687_p0 = scmp.ne.s32.totalorder %s3215_s4, %s2686_s13  ;;  %s39_s10 = int_to_ptr.vmem [resolvable:$true] %s38_s10 }
   0x4   :  { %p2690_p1 = scmp.lt.u32.totalorder %s2686_s13, %s3215_s4 }
   0x6   :  { %p2692_p2 = pnand %p2690_p1, %p2687_p0 }
   0x8   :  { %2695 = shalt.err (!%p2692_p2)
}
   0x9   :  { %s2696_s18 = scalar_lea.vmem %s39_s10, 512  ;;  %p2701_p4 = scmp.lt.s32.totalorder %s39_s10, %s39_s10 }
   0xa   :  { %p2697_p3 = scmp.ne.s32.totalorder %s39_s10, %s2696_s18  ;;  %p2702_p5 = scmp.lt.s32.totalorder %s2696_s18, %s2696_s18 }
   0xc   :  { %p2703_p6 = por %p2702_p5, %p2701_p4 }
   0xe   :  { %p2704_p7 = pnand %p2703_p6, %p2697_p3 }
  0x10   :  { %2707 = shalt.err (!%p2704_p7)
}
  0x11   :  { %s2781_s19 = smov 128   ;;  %s2782_s20 = smov 8  }
  0x12   :  { %44 = dma.hbm_to_vmem [thread:$0]  %s3215_s4, 512, %s39_s10, [#allocation7], %s2781_s19, %s2781_s19, %s2782_s20  }
  0x13   :  { %s2783_s23 = smov [#allocation4]   ;;  %s2784_s25 = smov [#allocation8]  }
  0x14   :  { %s25_s24 = sshll.u32 %s2783_s23, 4  ;;  %s50_s26 = sshll.u32 %s2784_s25, 4  ;;  %s26_s24 = int_to_ptr.vmem [resolvable:$true] %s25_s24  ;;  %s51_s26 = int_to_ptr.vmem [resolvable:$true] %s50_s26 }
  0x15   :  { %s2708_s29 = scalar_lea.hbm %s3212_s1, 64 }
  0x16   :  { %p2709_p8 = scmp.ne.s32.totalorder %s3212_s1, %s2708_s29  ;;  %p2712_p9 = scmp.lt.u32.totalorder %s2708_s29, %s3212_s1 }
  0x18   :  { %p2714_p10 = pnand %p2712_p9, %p2709_p8 }
  0x1a   :  { %2717 = shalt.err (!%p2714_p10)
}
  0x1b   :  { %s2718_s4 = scalar_lea.vmem %s26_s24, 64  ;;  %p2723_p12 = scmp.lt.s32.totalorder %s26_s24, %s26_s24 }
  0x1c   :  { %p2719_p11 = scmp.ne.s32.totalorder %s26_s24, %s2718_s4  ;;  %p2724_p13 = scmp.lt.s32.totalorder %s2718_s4, %s2718_s4 }
  0x1e   :  { %p2725_p0 = por %p2724_p13, %p2723_p12 }
  0x20   :  { %p2726_p1 = pnand %p2725_p0, %p2719_p11 }
  0x22   :  { %2729 = shalt.err (!%p2726_p1)
}
  0x23   :  { %28 = dma.hbm_to_vmem [thread:$0]  %s3212_s1, 64, %s26_s24, [#allocation5]  }
  0x24   :  { %s2730_s17 = scalar_lea.hbm %s3216_s5, 512 }
  0x25   :  { %p2731_p2 = scmp.ne.s32.totalorder %s3216_s5, %s2730_s17  ;;  %p2734_p3 = scmp.lt.u32.totalorder %s2730_s17, %s3216_s5 }
  0x27   :  { %p2736_p4 = pnand %p2734_p3, %p2731_p2 }
  0x29   :  { %2739 = shalt.err (!%p2736_p4)
}
  0x2a   :  { %s2740_s25 = scalar_lea.vmem %s51_s26, 512  ;;  %p2745_p6 = scmp.lt.s32.totalorder %s51_s26, %s51_s26 }
  0x2b   :  { %p2741_p5 = scmp.ne.s32.totalorder %s51_s26, %s2740_s25  ;;  %p2746_p7 = scmp.lt.s32.totalorder %s2740_s25, %s2740_s25 }
  0x2d   :  { %p2747_p8 = por %p2746_p7, %p2745_p6 }
  0x2f   :  { %p2748_p9 = pnand %p2747_p8, %p2741_p5 }
  0x31   :  { %2751 = shalt.err (!%p2748_p9)
}
  0x32   :  { %56 = dma.hbm_to_vmem [thread:$0]  %s3216_s5, 512, %s51_s26, [#allocation7], %s2781_s19, %s2781_s19, %s2782_s20  }
  0x33   :  { %s2785_s27 = smov [#allocation9]   ;;  %s2752_s11 = scalar_lea.hbm %s3218_s7, 512 }
  0x34   :  { %s64_s28 = sshll.u32 %s2785_s27, 4  ;;  %p2753_p10 = scmp.ne.s32.totalorder %s3218_s7, %s2752_s11  ;;  %s65_s28 = int_to_ptr.vmem [resolvable:$true] %s64_s28 }
  0x35   :  { %p2756_p11 = scmp.lt.u32.totalorder %s2752_s11, %s3218_s7 }
  0x37   :  { %p2758_p12 = pnand %p2756_p11, %p2753_p10 }
  0x39   :  { %2761 = shalt.err (!%p2758_p12)
}
  0x3a   :  { %s2762_s14 = scalar_lea.vmem %s65_s28, 512  ;;  %p2767_p0 = scmp.lt.s32.totalorder %s65_s28, %s65_s28 }
  0x3b   :  { %p2763_p13 = scmp.ne.s32.totalorder %s65_s28, %s2762_s14  ;;  %p2768_p1 = scmp.lt.s32.totalorder %s2762_s14, %s2762_s14 }
  0x3d   :  { %p2769_p2 = por %p2768_p1, %p2767_p0 }
  0x3f   :  { %p2770_p3 = pnand %p2769_p2, %p2763_p13 }
  0x41   :  { %2773 = shalt.err (!%p2770_p3)
}
  0x42   :  { %70 = dma.hbm_to_vmem [thread:$0]  %s3218_s7, 512, %s65_s28, [#allocation10], %s2781_s19, %s2781_s19, %s2782_s20  }
  0x43   :  { %2774 = dma.done.wait [#allocation5], 64  }
  0x44   :  { %2775 = vsyncadd [#allocation5], 4294967232 }
  0x45   :  { %2776 = dma.done.wait [#allocation7], 1024  }
  0x46   :  { %2777 = vsyncadd [#allocation7], 4294966272 }
  0x47   :  { %2778 = dma.done.wait [#allocation10], 512  }
  0x48   :  { %2779 = vsyncadd [#allocation10], 4294966784  ;;  %v2786_v0 = vmov 0.0|0.0   ;;  %vm2787_vm0 = vmmov 0   ;;  %v2788_v1 = vmov 0.0   ;;  %v2789_v2 = vmov 1  }
  0x49   :  { %2427 = vmatprep.subr.bf16.mxu0 %v2786_v0  ;;  %2228 = vmatprep.mubr.msk.f32.mxu0 %vm2787_vm0, %v2788_v1  ;;  %85 = vst [vmem:[#allocation2] sm:$0xff] %v2788_v1  ;;  %86 = vst [vmem:[#allocation2 + $0x8] sm:$0xff] %v2788_v1  ;;  %v2790_v3 = vmov 0   ;;  %v195_v4 = vld [vmem:[%s3213_s2] sm:$0xff]  ;;  %v196_v5 = vld [vmem:[%s3213_s2 + $0x8] sm:$0xff]  ;;  %v2791_v12 = vmov 2   ;;  %v123_v14 = vlaneseq }
  0x4a   :  { %87 = vst [vmem:[#allocation2 + $0x10] sm:$0xff] %v2788_v1  ;;  %88 = vst [vmem:[#allocation2 + $0x18] sm:$0xff] %v2788_v1  ;;  %2553 = vset.pattern.permute.xlu1 %v2789_v2  ;;  %2552 = vset.pattern.permute.xlu0 %v2790_v3  ;;  %v197_v6 = vld [vmem:[%s3213_s2 + $0x10] sm:$0xff]  ;;  %v2925_v7 = vpack.c.bf16 %v196_v5, %v195_v4  ;;  %v198_v8 = vld [vmem:[%s3213_s2 + $0x18] sm:$0xff]  ;;  %v2792_v13 = vmov 3   ;;  %vm93_vm1 = vcmask 261120  }
  0x4b   :  { %89 = vst [vmem:[#allocation2 + $0x20] sm:$0xff] %v2788_v1  ;;  %90 = vst [vmem:[#allocation2 + $0x28] sm:$0xff] %v2788_v1  ;;  %2433 = vmatprep.subr.bf16.mxu1 %v2786_v0  ;;  %2239 = vmatprep.mubr.msk.f32.mxu1 %vm2787_vm0, %v2788_v1  ;;  %v104_v9 = vld [vmem:[%s3211_s0] sm:$0xff]  ;;  %v2934_v10 = vpack.c.bf16 %v198_v8, %v197_v6  ;;  %v105_v11 = vld [vmem:[%s3211_s0 + $0x8] sm:$0xff]  ;;  %v124_v15 = vshrl.u32 %v123_v14, 7  ;;  %s2794_s24 = smov 64  }
  0x4c   :  { %91 = vst [vmem:[#allocation2 + $0x30] sm:$0xff] %v2788_v1  ;;  %92 = vst [vmem:[#allocation2 + $0x38] sm:$0xff] %v2788_v1  ;;  %132 = vperm.xlu1 %2553, %v104_v9   ;;  %115 = vperm.xlu0 %2552, %v104_v9   ;;  %v102_v17 = vld [vmem:[#allocation4] sm:$0xf]  ;;  %v2081_v24 = vld [vmem:[%s3214_s3] ss:$0 sm:$0xff] }
  0x4d   :  { %2429 = vmatpush3.bf16.msra.mxu0 %v2925_v7  ;;  %2435 = vmatpush3.bf16.msra.mxu1 %v2925_v7  ;;  %v125_v16 = vsub.s32 0, %v124_v15  ;;  %v141_v18 = vsub.s32 1, %v124_v15  ;;  %v157_v25 = vsub.s32 2, %v124_v15  ;;  %v173_v34 = vsub.s32 3, %v124_v15  ;;  %s2793_s3 = smov 32   ;;  %94 = vst.msk [vmem:[#allocation3] sm:$0xff] %vm93_vm1, %v2788_v1 }
  0x4e   :  { %2430 = vmatprep.subr.bf16.mxu0 %v2786_v0  ;;  %2436 = vmatprep.subr.bf16.mxu1 %v2786_v0  ;;  %95 = vst.msk [vmem:[#allocation3 + $0x8] sm:$0xff] %vm93_vm1, %v2788_v1  ;;  %96 = vst.msk [vmem:[#allocation3 + $0x10] sm:$0xff] %vm93_vm1, %v2788_v1 }
  0x4f   :  { %v126_v19 = vrot.slane %v102_v17, %v125_v16  ;;  %v142_v22 = vrot.slane %v102_v17, %v141_v18  ;;  %v158_v32 = vrot.slane %v102_v17, %v157_v25  ;;  %v174_v41 = vrot.slane %v102_v17, %v173_v34  ;;  %97 = vst.msk [vmem:[#allocation3 + $0x18] sm:$0xff] %vm93_vm1, %v2788_v1 }
  0x50   :  { %136 = vperm.xlu1 %2553, %v105_v11   ;;  %120 = vperm.xlu0 %2552, %v105_v11   ;;  %98 = vst.msk [vmem:[#allocation3 + $0x20] sm:$0xff] %vm93_vm1, %v2788_v1  ;;  %99 = vst.msk [vmem:[#allocation3 + $0x28] sm:$0xff] %vm93_vm1, %v2788_v1 }
  0x51   :  { %2432 = vmatpush3.bf16.msra.mxu0 %v2934_v10  ;;  %2438 = vmatpush3.bf16.msra.mxu1 %v2934_v10  ;;  %100 = vst.msk [vmem:[#allocation3 + $0x30] sm:$0xff] %vm93_vm1, %v2788_v1  ;;  %101 = vst.msk [vmem:[#allocation3 + $0x38] sm:$0xff] %vm93_vm1, %v2788_v1 }
  0x52   :  { %2439 = vmatprep.subr.bf16.mxu0 %v2786_v0  ;;  %2445 = vmatprep.subr.bf16.mxu1 %v2786_v0 }
  0x54   :  { %2229 = vmatmul.mubr.f32.vlgmr.msra.gmra.mrb[0].mxu0 %v2788_v1  ;;  %2555 = vset.pattern.permute.xlu1 %v2791_v12 }
  0x55   :  { %2554 = vset.pattern.permute.xlu0 %v2791_v12  ;;  %152 = vperm.xlu1 %2555, %v105_v11  }
  0x56   :  { %148 = vperm.xlu0 %2554, %v104_v9   ;;  %2441 = vmatpush3.bf16.msra.mxu0 %v2925_v7 }
  0x57   :  { %2442 = vmatprep.subr.bf16.mxu0 %v2786_v0  ;;  %2250 = vmatprep.mubr.msk.f32.mxu0 %vm2787_vm0, %v2788_v1 }
  0x59   :  { %2556 = vset.pattern.permute.xlu1 %v2792_v13 }
  0x5a   :  { %2557 = vset.pattern.permute.xlu0 %v2792_v13  ;;  %164 = vperm.xlu1 %2556, %v104_v9  }
  0x5b   :  { %168 = vperm.xlu0 %2557, %v105_v11   ;;  %2444 = vmatpush3.bf16.msra.mxu0 %v2934_v10 }
  0x5c   :  { %2451 = vmatprep.subr.bf16.mxu0 %v2786_v0 }
  0xcb   :  { %v133_v20 = vpop.permute.xlu1 %132  ;;  %v116_v21 = vpop.permute.xlu0 %115 }
  0xcc   :  { %v127_v23 = vmul.f32 %v126_v19, %v116_v21  ;;  %v143_v28 = vmul.f32 %v142_v22, %v133_v20 }
  0xce   :  { %v129_v29 = vadd.f32 %v2081_v24, %v127_v23 }
  0xcf   :  { %v137_v26 = vpop.permute.xlu1 %136  ;;  %v121_v27 = vpop.permute.xlu0 %120 }
  0xd0   :  { %v128_v30 = vmul.f32 %v126_v19, %v121_v27  ;;  %v144_v31 = vmul.f32 %v142_v22, %v137_v26  ;;  %v145_v36 = vadd.f32 %v143_v28, %v129_v29 }
  0xd2   :  { %v130_v33 = vadd.f32 %v2081_v24, %v128_v30 }
  0xd4   :  { %v153_v35 = vpop.permute.xlu1 %152  ;;  %v146_v37 = vadd.f32 %v144_v31, %v130_v33 }
  0xd5   :  { %v160_v38 = vmul.f32 %v158_v32, %v153_v35  ;;  %v149_v39 = vpop.permute.xlu0 %148 }
  0xd6   :  { %v159_v40 = vmul.f32 %v158_v32, %v149_v39 }
  0xd7   :  { %v162_v43 = vadd.f32 %v160_v38, %v146_v37 }
  0xd8   :  { %v161_v42 = vadd.f32 %v159_v40, %v145_v36 }
  0xd9   :  { %v165_v44 = vpop.permute.xlu1 %164 }
  0xda   :  { %v175_v45 = vmul.f32 %v174_v41, %v165_v44  ;;  %v169_v46 = vpop.permute.xlu0 %168 }
  0xdb   :  { %v176_v47 = vmul.f32 %v174_v41, %v169_v46 }
  0xdc   :  { %v177_v48 = vadd.f32 %v175_v45, %v161_v42 }
  0xdd   :  { %v178_v49 = vadd.f32 %v176_v47, %v162_v43 }
  0xde   :  { %179 = vst [vmem:[#allocation2] ss:$39 sps:$4 sm:$0x21] %v177_v48   ;;  %181 = vst [vmem:[#allocation2 + $0x7] ss:$25 sps:$4 sm:$0x12] %v177_v48  }
  0xdf   :  { %183 = vst [vmem:[#allocation2 + $0xe] ss:$39 sps:$4 sm:$0x84] %v177_v48   ;;  %185 = vst [vmem:[#allocation2 + $0x15] ss:$25 sps:$4 sm:$0x48] %v177_v48  }
  0xe0   :  { %180 = vst [vmem:[#allocation2 + $0x1] ss:$39 sps:$4 sm:$0x21] %v178_v49   ;;  %182 = vst [vmem:[#allocation2 + $0x8] ss:$25 sps:$4 sm:$0x12] %v178_v49  }
  0xe1   :  { %184 = vst [vmem:[#allocation2 + $0xf] ss:$39 sps:$4 sm:$0x84] %v178_v49   ;;  %186 = vst [vmem:[#allocation2 + $0x16] ss:$25 sps:$4 sm:$0x48] %v178_v49  }
  0xe7   :  { %v199_v50 = vld [vmem:[#allocation2] sm:$0xff]  ;;  %v303_v6 = vld [vmem:[#allocation2 + $0x8] sm:$0xff] }
  0xe8   :  { %v406_v26 = vld [vmem:[#allocation2 + $0x10] sm:$0xff]  ;;  %v509_v44 = vld [vmem:[#allocation2 + $0x18] sm:$0xff] }
 0x127   :  { %v269_v51 = vpop.f32.mrb[0].mxu0 }
 0x128   :  { %v273_v52 = vadd.f32 %v269_v51, %v199_v50  ;;  %v2230_v53 = vpop.f32.mrb[1].mxu0 }
 0x12a   :  { %2558 = vtanh.f32 %v273_v52  ;;  %v2082_v55 = vmul.f32 -1.442695, %v273_v52 }
 0x12c   :  { %2560 = vpow2.f32 %v2082_v55 }
 0x134   :  { %v2559_v54 = vpop.eup %2558 }
 0x135   :  { %283 = vrot.lane.b32.xlu1 %v2559_v54, %s2793_s3 }
 0x136   :  { %v2561_v56 = vpop.eup %2560 }
 0x137   :  { %v277_v57 = vadd.f32 1.0, %v2561_v56 }
 0x139   :  { %2562 = vrcp.f32 %v277_v57 }
 0x143   :  { %v2563_v58 = vpop.eup %2562 }
 0x144   :  { %v281_v61 = vmul.f32 0.0, %v2563_v58 }
 0x1a7   :  { %v284_v59 = vpop.permute.xlu1 %283 }
 0x1a8   :  { %v286_v60 = vmul.f32 %v2563_v58, %v284_v59 }
 0x1aa   :  { %288 = vrot.lane.b32.xlu1 %v286_v60, %s2793_s3 }
 0x21c   :  { %v289_v62 = vpop.permute.xlu1 %288 }
 0x21d   :  { %v291_v63 = vadd.f32 %v289_v62, %v281_v61  ;;  %v612_v62 = vld [vmem:[#allocation2 + $0x20] sm:$0xff] }
 0x21f   :  { %2564 = vtanh.f32 %v291_v63 }
 0x229   :  { %v2565_v2 = vpop.eup %2564 }
 0x22a   :  { %294 = vrot.lane.b32.xlu0 %v2565_v2, %s2793_s3 }
 0x29c   :  { %v295_v3 = vpop.permute.xlu0 %294 }
 0x29d   :  { %v297_v4 = vmul.f32 %v2563_v58, %v295_v3 }
 0x29f   :  { %299 = vrot.lane.b32.xlu1 %v297_v4, %s2794_s24 }
 0x311   :  { %v300_v5 = vpop.permute.xlu1 %299 }
 0x312   :  { %302 = vst.msk [vmem:[#allocation3] sm:$0xff] %vm93_vm1, %v300_v5  ;;  %2240 = vmatmul.mubr.msk.f32.vlgmr.msra.gmra.mrb[0].mxu1 %vm93_vm1, %v300_v5 }
 0x313   :  { %2447 = vmatpush3.bf16.msra.mxu1 %v2925_v7  ;;  %2261 = vmatprep.mubr.msk.f32.mxu1 %vm2787_vm0, %v2788_v1 }
 0x314   :  { %2448 = vmatprep.subr.bf16.mxu1 %v2786_v0 }
 0x317   :  { %2450 = vmatpush3.bf16.msra.mxu1 %v2934_v10 }
 0x318   :  { %2457 = vmatprep.subr.bf16.mxu1 %v2786_v0 }
 0x3e5   :  { %v372_v8 = vpop.f32.mrb[0].mxu1 }
 0x3e6   :  { %v376_v9 = vadd.f32 %v372_v8, %v303_v6  ;;  %v2241_v11 = vpop.f32.mrb[1].mxu1 }
 0x3e8   :  { %2566 = vtanh.f32 %v376_v9  ;;  %v2084_v13 = vmul.f32 -1.442695, %v376_v9 }
 0x3ea   :  { %2568 = vpow2.f32 %v2084_v13 }
 0x3f2   :  { %v2567_v12 = vpop.eup %2566 }
 0x3f3   :  { %386 = vrot.lane.b32.xlu0 %v2567_v12, %s2793_s3 }
 0x3f4   :  { %v2569_v14 = vpop.eup %2568 }
 0x3f5   :  { %v380_v15 = vadd.f32 1.0, %v2569_v14 }
 0x3f7   :  { %2570 = vrcp.f32 %v380_v15 }
 0x401   :  { %v2571_v16 = vpop.eup %2570 }
 0x402   :  { %v384_v19 = vmul.f32 %v2571_v16, %v291_v63 }
 0x465   :  { %v387_v17 = vpop.permute.xlu0 %386 }
 0x466   :  { %v389_v18 = vmul.f32 %v2571_v16, %v387_v17 }
 0x468   :  { %391 = vrot.lane.b32.xlu1 %v389_v18, %s2793_s3 }
 0x4da   :  { %v392_v20 = vpop.permute.xlu1 %391 }
 0x4db   :  { %v394_v21 = vadd.f32 %v392_v20, %v384_v19  ;;  %v715_v20 = vld [vmem:[#allocation2 + $0x28] sm:$0xff] }
 0x4dd   :  { %2572 = vtanh.f32 %v394_v21 }
 0x4e7   :  { %v2573_v22 = vpop.eup %2572 }
 0x4e8   :  { %397 = vrot.lane.b32.xlu0 %v2573_v22, %s2793_s3 }
 0x55a   :  { %v398_v23 = vpop.permute.xlu0 %397 }
 0x55b   :  { %v400_v24 = vmul.f32 %v2571_v16, %v398_v23 }
 0x55d   :  { %402 = vrot.lane.b32.xlu1 %v400_v24, %s2794_s24 }
 0x5cf   :  { %v403_v25 = vpop.permute.xlu1 %402 }
 0x5d0   :  { %405 = vst.msk [vmem:[#allocation3 + $0x8] sm:$0xff] %vm93_vm1, %v403_v25  ;;  %2251 = vmatmul.mubr.msk.f32.vlgmr.msra.gmra.mrb[2].mxu0 %vm93_vm1, %v403_v25 }
 0x5d1   :  { %2453 = vmatpush3.bf16.msra.mxu0 %v2925_v7  ;;  %2272 = vmatprep.mubr.msk.f32.mxu0 %vm2787_vm0, %v2788_v1 }
 0x5d2   :  { %2454 = vmatprep.subr.bf16.mxu0 %v2786_v0 }
 0x5d5   :  { %2456 = vmatpush3.bf16.msra.mxu0 %v2934_v10 }
 0x5d6   :  { %2463 = vmatprep.subr.bf16.mxu0 %v2786_v0 }
 0x6a3   :  { %v475_v27 = vpop.f32.mrb[2].mxu0 }
 0x6a4   :  { %v479_v28 = vadd.f32 %v475_v27, %v406_v26  ;;  %v2252_v29 = vpop.f32.mrb[3].mxu0 }
 0x6a6   :  { %2574 = vtanh.f32 %v479_v28  ;;  %v2086_v31 = vmul.f32 -1.442695, %v479_v28 }
 0x6a8   :  { %2576 = vpow2.f32 %v2086_v31 }
 0x6b0   :  { %v2575_v30 = vpop.eup %2574 }
 0x6b1   :  { %489 = vrot.lane.b32.xlu0 %v2575_v30, %s2793_s3 }
 0x6b2   :  { %v2577_v32 = vpop.eup %2576 }
 0x6b3   :  { %v483_v33 = vadd.f32 1.0, %v2577_v32  ;;  %v1028_v32 = vld [vmem:[#allocation6] sm:$0xff] }
 0x6b5   :  { %2578 = vrcp.f32 %v483_v33  ;;  %v1029_v33 = vld [vmem:[#allocation6 + $0x8] sm:$0xff] }
 0x6bf   :  { %v2579_v34 = vpop.eup %2578 }
 0x6c0   :  { %v487_v37 = vmul.f32 %v2579_v34, %v394_v21 }
 0x723   :  { %v490_v35 = vpop.permute.xlu0 %489 }
 0x724   :  { %v492_v36 = vmul.f32 %v2579_v34, %v490_v35 }
 0x726   :  { %494 = vrot.lane.b32.xlu1 %v492_v36, %s2793_s3 }
 0x798   :  { %v495_v38 = vpop.permute.xlu1 %494 }
 0x799   :  { %v497_v39 = vadd.f32 %v495_v38, %v487_v37  ;;  %v1030_v38 = vld [vmem:[#allocation6 + $0x10] sm:$0xff] }
 0x79b   :  { %2580 = vtanh.f32 %v497_v39 }
 0x7a5   :  { %v2581_v40 = vpop.eup %2580 }
 0x7a6   :  { %500 = vrot.lane.b32.xlu0 %v2581_v40, %s2793_s3 }
 0x818   :  { %v501_v41 = vpop.permute.xlu0 %500 }
 0x819   :  { %v503_v42 = vmul.f32 %v2579_v34, %v501_v41  ;;  %v2475_v34 = vpack.c.bf16 %v1029_v33, %v1028_v32 }
 0x81b   :  { %505 = vrot.lane.b32.xlu1 %v503_v42, %s2794_s24  ;;  %v1033_v42 = vld [vmem:[#allocation3] sm:$0xff] }
 0x88d   :  { %v506_v43 = vpop.permute.xlu1 %505 }
 0x88e   :  { %508 = vst.msk [vmem:[#allocation3 + $0x10] sm:$0xff] %vm93_vm1, %v506_v43  ;;  %2262 = vmatmul.mubr.msk.f32.vlgmr.msra.gmra.mrb[2].mxu1 %vm93_vm1, %v506_v43  ;;  %v1034_v43 = vld [vmem:[#allocation3 + $0x8] sm:$0xff] }
 0x88f   :  { %2459 = vmatpush3.bf16.msra.mxu1 %v2925_v7  ;;  %2283 = vmatprep.mubr.msk.f32.mxu1 %vm2787_vm0, %v2788_v1 }
 0x890   :  { %2460 = vmatprep.subr.bf16.mxu1 %v2786_v0 }
 0x893   :  { %2462 = vmatpush3.bf16.msra.mxu1 %v2934_v10 }
 0x894   :  { %2469 = vmatprep.subr.bf16.mxu1 %v2786_v0 }
 0x961   :  { %v578_v45 = vpop.f32.mrb[2].mxu1 }
 0x962   :  { %v582_v46 = vadd.f32 %v578_v45, %v509_v44  ;;  %v2263_v47 = vpop.f32.mrb[3].mxu1  ;;  %v1035_v44 = vld [vmem:[#allocation3 + $0x10] sm:$0xff] }
 0x964   :  { %2582 = vtanh.f32 %v582_v46  ;;  %v2088_v49 = vmul.f32 -1.442695, %v582_v46 }
 0x966   :  { %2584 = vpow2.f32 %v2088_v49 }
 0x96e   :  { %v2583_v48 = vpop.eup %2582 }
 0x96f   :  { %592 = vrot.lane.b32.xlu0 %v2583_v48, %s2793_s3  ;;  %v818_v48 = vld [vmem:[#allocation2 + $0x30] sm:$0xff] }
 0x970   :  { %v2585_v50 = vpop.eup %2584 }
 0x971   :  { %v586_v51 = vadd.f32 1.0, %v2585_v50 }
 0x973   :  { %2586 = vrcp.f32 %v586_v51 }
 0x97d   :  { %v2587_v52 = vpop.eup %2586 }
 0x97e   :  { %v590_v55 = vmul.f32 %v2587_v52, %v497_v39  ;;  %v1031_v39 = vld [vmem:[#allocation6 + $0x18] sm:$0xff] }
 0x97f   :  { %v2479_v40 = vpack.c.bf16 %v1031_v39, %v1030_v38  ;;  %v921_v39 = vld [vmem:[#allocation2 + $0x38] sm:$0xff] }
 0x9e1   :  { %v593_v53 = vpop.permute.xlu0 %592 }
 0x9e2   :  { %v595_v54 = vmul.f32 %v2587_v52, %v593_v53 }
 0x9e4   :  { %597 = vrot.lane.b32.xlu1 %v595_v54, %s2793_s3 }
 0xa56   :  { %v598_v56 = vpop.permute.xlu1 %597 }
 0xa57   :  { %v600_v57 = vadd.f32 %v598_v56, %v590_v55 }
 0xa59   :  { %2588 = vtanh.f32 %v600_v57 }
 0xa63   :  { %v2589_v58 = vpop.eup %2588 }
 0xa64   :  { %603 = vrot.lane.b32.xlu0 %v2589_v58, %s2793_s3 }
 0xad6   :  { %v604_v59 = vpop.permute.xlu0 %603 }
 0xad7   :  { %v606_v60 = vmul.f32 %v2587_v52, %v604_v59  ;;  %v3050_v52 = vld [vmem:[%s3217_s6] ss:$0 sm:$0xff] }
 0xad9   :  { %608 = vrot.lane.b32.xlu1 %v606_v60, %s2794_s24 }
 0xb4b   :  { %v609_v61 = vpop.permute.xlu1 %608 }
 0xb4c   :  { %611 = vst.msk [vmem:[#allocation3 + $0x18] sm:$0xff] %vm93_vm1, %v609_v61  ;;  %2273 = vmatmul.mubr.msk.f32.vlgmr.msra.gmra.mrb[4].mxu0 %vm93_vm1, %v609_v61 }
 0xb4d   :  { %2465 = vmatpush3.bf16.msra.mxu0 %v2925_v7  ;;  %2294 = vmatprep.mubr.msk.f32.mxu0 %vm2787_vm0, %v2788_v1 }
 0xb4e   :  { %2466 = vmatprep.subr.bf16.mxu0 %v2786_v0 }
 0xb51   :  { %2468 = vmatpush3.bf16.msra.mxu0 %v2934_v10 }
 0xb52   :  { %2476 = vmatprep.subr.bf16.mxu0 %v2475_v34 }
 0xb53   :  { %v1036_v45 = vld [vmem:[#allocation3 + $0x18] sm:$0xff] }
 0xc1f   :  { %v681_v63 = vpop.f32.mrb[4].mxu0 }
 0xc20   :  { %v685_v2 = vadd.f32 %v681_v63, %v612_v62  ;;  %v2274_v3 = vpop.f32.mrb[5].mxu0 }
 0xc22   :  { %2590 = vtanh.f32 %v685_v2  ;;  %v2090_v5 = vmul.f32 -1.442695, %v685_v2 }
 0xc24   :  { %2592 = vpow2.f32 %v2090_v5 }
 0xc2c   :  { %v2591_v4 = vpop.eup %2590 }
 0xc2d   :  { %695 = vrot.lane.b32.xlu0 %v2591_v4, %s2793_s3 }
 0xc2e   :  { %v2593_v6 = vpop.eup %2592 }
 0xc2f   :  { %v689_v8 = vadd.f32 1.0, %v2593_v6 }
 0xc31   :  { %2594 = vrcp.f32 %v689_v8 }
 0xc3b   :  { %v2595_v9 = vpop.eup %2594 }
 0xc3c   :  { %v693_v13 = vmul.f32 %v2595_v9, %v600_v57 }
 0xc9f   :  { %v696_v11 = vpop.permute.xlu0 %695 }
 0xca0   :  { %v698_v12 = vmul.f32 %v2595_v9, %v696_v11 }
 0xca2   :  { %700 = vrot.lane.b32.xlu1 %v698_v12, %s2793_s3 }
 0xd14   :  { %v701_v14 = vpop.permute.xlu1 %700 }
 0xd15   :  { %v703_v15 = vadd.f32 %v701_v14, %v693_v13 }
 0xd17   :  { %2596 = vtanh.f32 %v703_v15 }
 0xd21   :  { %v2597_v16 = vpop.eup %2596 }
 0xd22   :  { %706 = vrot.lane.b32.xlu0 %v2597_v16, %s2793_s3  ;;  %v1024_v16 = vld [vmem:[#allocation8] sm:$0xff] }
 0xd94   :  { %v707_v17 = vpop.permute.xlu0 %706 }
 0xd95   :  { %v709_v18 = vmul.f32 %v2595_v9, %v707_v17  ;;  %v1025_v17 = vld [vmem:[#allocation8 + $0x8] sm:$0xff] }
 0xd97   :  { %711 = vrot.lane.b32.xlu1 %v709_v18, %s2794_s24  ;;  %v3083_v18 = vpack.c.bf16 %v1025_v17, %v1024_v16 }
 0xe09   :  { %v712_v19 = vpop.permute.xlu1 %711 }
 0xe0a   :  { %714 = vst.msk [vmem:[#allocation3 + $0x20] sm:$0xff] %vm93_vm1, %v712_v19  ;;  %2284 = vmatmul.mubr.msk.f32.vlgmr.msra.gmra.mrb[4].mxu1 %vm93_vm1, %v712_v19  ;;  %v1026_v19 = vld [vmem:[#allocation8 + $0x10] sm:$0xff] }
 0xe0b   :  { %2471 = vmatpush3.bf16.msra.mxu1 %v2925_v7  ;;  %2305 = vmatprep.mubr.msk.f32.mxu1 %vm2787_vm0, %v2788_v1 }
 0xe0c   :  { %2472 = vmatprep.subr.bf16.mxu1 %v2786_v0 }
 0xe0f   :  { %2474 = vmatpush3.bf16.msra.mxu1 %v2934_v10 }
 0xe10   :  { %2483 = vmatprep.subr.bf16.mxu1 %v2786_v0 }
 0xe11   :  { %v1037_v46 = vld [vmem:[#allocation3 + $0x20] sm:$0xff] }
 0xedd   :  { %v784_v21 = vpop.f32.mrb[4].mxu1 }
 0xede   :  { %v788_v22 = vadd.f32 %v784_v21, %v715_v20  ;;  %v2285_v23 = vpop.f32.mrb[5].mxu1  ;;  %v1027_v20 = vld [vmem:[#allocation8 + $0x18] sm:$0xff] }
 0xedf   :  { %v3087_v21 = vpack.c.bf16 %v1027_v20, %v1026_v19 }
 0xee0   :  { %2598 = vtanh.f32 %v788_v22  ;;  %v2092_v25 = vmul.f32 -1.442695, %v788_v22 }
 0xee2   :  { %2600 = vpow2.f32 %v2092_v25 }
 0xeea   :  { %v2599_v24 = vpop.eup %2598 }
 0xeeb   :  { %798 = vrot.lane.b32.xlu0 %v2599_v24, %s2793_s3 }
 0xeec   :  { %v2601_v7 = vpop.eup %2600 }
 0xeed   :  { %v792_v26 = vadd.f32 1.0, %v2601_v7 }
 0xeef   :  { %2602 = vrcp.f32 %v792_v26 }
 0xef9   :  { %v2603_v27 = vpop.eup %2602 }
 0xefa   :  { %v796_v10 = vmul.f32 %v2603_v27, %v703_v15 }
 0xf5d   :  { %v799_v28 = vpop.permute.xlu0 %798 }
 0xf5e   :  { %v801_v29 = vmul.f32 %v2603_v27, %v799_v28 }
 0xf60   :  { %803 = vrot.lane.b32.xlu1 %v801_v29, %s2793_s3 }
 0xfd2   :  { %v804_v30 = vpop.permute.xlu1 %803 }
 0xfd3   :  { %v3033_v31 = vadd.f32 %v804_v30, %v796_v10 }
 0xfd5   :  { %2604 = vtanh.f32 %v3033_v31 }
 0xfdf   :  { %v2605_v35 = vpop.eup %2604 }
 0xfe0   :  { %809 = vrot.lane.b32.xlu0 %v2605_v35, %s2793_s3 }
0x1052   :  { %v810_v36 = vpop.permute.xlu0 %809 }
0x1053   :  { %v812_v37 = vmul.f32 %v2603_v27, %v810_v36 }
0x1055   :  { %814 = vrot.lane.b32.xlu1 %v812_v37, %s2794_s24 }
0x10c7   :  { %v815_v41 = vpop.permute.xlu1 %814 }
0x10c8   :  { %817 = vst.msk [vmem:[#allocation3 + $0x28] sm:$0xff] %vm93_vm1, %v815_v41  ;;  %2295 = vmatmul.mubr.msk.f32.vlgmr.msra.gmra.mrb[6].mxu0 %vm93_vm1, %v815_v41 }
0x10c9   :  { %2478 = vmatpush3.bf16.msra.mxu0 %v2475_v34  ;;  %2316 = vmatprep.mubr.msk.f32.mxu0 %vm93_vm1, %v1033_v42 }
0x10ca   :  { %2480 = vmatprep.subr.bf16.mxu0 %v2479_v40 }
0x10cd   :  { %2482 = vmatpush3.bf16.msra.mxu0 %v2479_v40 }
0x10ce   :  { %2495 = vmatprep.subr.bf16.mxu0 %v2786_v0 }
0x10cf   :  { %v1038_v47 = vld [vmem:[#allocation3 + $0x28] sm:$0xff] }
0x10d0   :  { %2317 = vmatmul.mubr.msk.f32.vlgmr.msra.gmra.mrb[8].mxu0 %vm93_vm1, %v1034_v43 }
0x10d1   :  { %2319 = vmatprep.mubr.msk.f32.mxu0 %vm93_vm1, %v1035_v44  ;;  %2497 = vmatpush3.bf16.msra.mxu0 %v3083_v18 }
0x10d2   :  { %2498 = vmatprep.subr.bf16.mxu0 %v2786_v0 }
0x10d4   :  { %2320 = vmatmul.mubr.msk.f32.gmra.mrb[10].mxu0 %vm93_vm1, %v1036_v45 }
0x10d5   :  { %2322 = vmatprep.mubr.msk.f32.mxu0 %vm93_vm1, %v1037_v46  ;;  %2500 = vmatpush3.bf16.msra.mxu0 %v3087_v21 }
0x10d6   :  { %2507 = vmatprep.subr.bf16.mxu0 %v2786_v0 }
0x10d8   :  { %2323 = vmatmul.mubr.msk.f32.gmra.mrb[12].mxu0 %vm93_vm1, %v1038_v47 }
0x119b   :  { %v887_v49 = vpop.f32.mrb[6].mxu0 }
0x119c   :  { %v891_v50 = vadd.f32 %v887_v49, %v818_v48  ;;  %v2296_v51 = vpop.f32.mrb[7].mxu0 }
0x119e   :  { %2606 = vtanh.f32 %v891_v50  ;;  %v2094_v4 = vmul.f32 -1.442695, %v891_v50 }
0x11a0   :  { %2608 = vpow2.f32 %v2094_v4 }
0x11a3   :  { %v2318_v53 = vpop.f32.mrb[8].mxu0 }
0x11a4   :  { %v3053_v54 = vadd.f32 %v2318_v53, %v3050_v52  ;;  %v1137_v55 = vpop.f32.mrb[9].mxu0 }
0x11a5   :  { %v3056_v56 = vadd.f32 %v3050_v52, %v1137_v55 }
0x11a6   :  { %1177 = vst [vmem:[#allocation2 + $0x8] sm:$0xff] %v3053_v54 }
0x11a7   :  { %1176 = vst [vmem:[#allocation2] sm:$0xff] %v3056_v56  ;;  %v2321_v57 = vpop.f32.mrb[10].mxu0 }
0x11a8   :  { %v2607_v58 = vpop.eup %2606  ;;  %v3061_v59 = vadd.f32 %v2321_v57, %v3050_v52  ;;  %v1147_v60 = vpop.f32.mrb[11].mxu0 }
0x11a9   :  { %v3064_v61 = vadd.f32 %v3050_v52, %v1147_v60  ;;  %901 = vrot.lane.b32.xlu0 %v2607_v58, %s2793_s3 }
0x11aa   :  { %1179 = vst [vmem:[#allocation2 + $0x18] sm:$0xff] %v3061_v59  ;;  %v2609_v5 = vpop.eup %2608 }
0x11ab   :  { %1178 = vst [vmem:[#allocation2 + $0x10] sm:$0xff] %v3064_v61  ;;  %v2324_v62 = vpop.f32.mrb[12].mxu0  ;;  %v895_v6 = vadd.f32 1.0, %v2609_v5 }
0x11ac   :  { %v3070_v63 = vadd.f32 %v2324_v62, %v3050_v52  ;;  %v1157_v2 = vpop.f32.mrb[13].mxu0 }
0x11ad   :  { %v3073_v3 = vadd.f32 %v3050_v52, %v1157_v2  ;;  %2610 = vrcp.f32 %v895_v6 }
0x11ae   :  { %1181 = vst [vmem:[#allocation2 + $0x28] sm:$0xff] %v3070_v63 }
0x11af   :  { %1180 = vst [vmem:[#allocation2 + $0x20] sm:$0xff] %v3073_v3 }
0x11b7   :  { %v2611_v8 = vpop.eup %2610 }
0x11b8   :  { %v899_v12 = vmul.f32 %v2611_v8, %v3033_v31 }
0x121b   :  { %v902_v9 = vpop.permute.xlu0 %901 }
0x121c   :  { %v904_v11 = vmul.f32 %v2611_v8, %v902_v9 }
0x121e   :  { %906 = vrot.lane.b32.xlu1 %v904_v11, %s2793_s3 }
0x1290   :  { %v907_v13 = vpop.permute.xlu1 %906 }
0x1291   :  { %v3079_v14 = vadd.f32 %v907_v13, %v899_v12 }
0x1293   :  { %2612 = vtanh.f32 %v3079_v14 }
0x129d   :  { %v2613_v15 = vpop.eup %2612 }
0x129e   :  { %912 = vrot.lane.b32.xlu0 %v2613_v15, %s2793_s3 }
0x1310   :  { %v913_v22 = vpop.permute.xlu0 %912 }
0x1311   :  { %v915_v23 = vmul.f32 %v2611_v8, %v913_v22 }
0x1313   :  { %917 = vrot.lane.b32.xlu1 %v915_v23, %s2794_s24 }
0x1385   :  { %v918_v24 = vpop.permute.xlu1 %917 }
0x1386   :  { %920 = vst.msk [vmem:[#allocation3 + $0x30] sm:$0xff] %vm93_vm1, %v918_v24  ;;  %2306 = vmatmul.mubr.msk.f32.vlgmr.msra.gmra.mrb[6].mxu1 %vm93_vm1, %v918_v24 }
0x1387   :  { %2485 = vmatpush3.bf16.msra.mxu1 %v3083_v18  ;;  %2336 = vmatprep.mubr.msk.f32.mxu1 %vm2787_vm0, %v2788_v1 }
0x1388   :  { %2486 = vmatprep.subr.bf16.mxu1 %v2786_v0 }
0x138b   :  { %2488 = vmatpush3.bf16.msra.mxu1 %v3087_v21 }
0x138c   :  { %2489 = vmatprep.subr.bf16.mxu1 %v2786_v0 }
0x138d   :  { %v1039_v25 = vld [vmem:[#allocation3 + $0x30] sm:$0xff] }
0x138e   :  { %2337 = vmatmul.mubr.f32.vlgmr.msra.gmra.mrb[8].mxu1 %v2788_v1  ;;  %2325 = vmatprep.mubr.msk.f32.mxu0 %vm93_vm1, %v1039_v25 }
0x138f   :  { %2491 = vmatpush3.bf16.msra.mxu1 %v3083_v18  ;;  %2347 = vmatprep.mubr.msk.f32.mxu1 %vm2787_vm0, %v2788_v1 }
0x1390   :  { %2492 = vmatprep.subr.bf16.mxu1 %v2786_v0 }
0x1393   :  { %2494 = vmatpush3.bf16.msra.mxu1 %v3087_v21 }
0x1394   :  { %2501 = vmatprep.subr.bf16.mxu1 %v2786_v0 }
0x1459   :  { %v990_v7 = vpop.f32.mrb[6].mxu1 }
0x145a   :  { %v2307_v26 = vpop.f32.mrb[7].mxu1  ;;  %v994_v40 = vadd.f32 %v990_v7, %v921_v39 }
0x145c   :  { %v2096_v43 = vmul.f32 -1.442695, %v994_v40 }
0x1461   :  { %v1251_v27 = vpop.f32.mrb[8].mxu1 }
0x1462   :  { %v1255_v28 = vadd.f32 %v1251_v27, %v3056_v56  ;;  %v2338_v29 = vpop.f32.mrb[9].mxu1 }
0x1464   :  { %2614 = vtanh.f32 %v1255_v28  ;;  %v2106_v30 = vmul.f32 -1.442695, %v1255_v28 }
0x1466   :  { %2616 = vpow2.f32 %v2106_v30 }
0x146e   :  { %v2615_v10 = vpop.eup %2614 }
0x146f   :  { %1265 = vrot.lane.b32.xlu0 %v2615_v10, %s2793_s3 }
0x1470   :  { %v2617_v31 = vpop.eup %2616 }
0x1471   :  { %v1259_v32 = vadd.f32 1.0, %v2617_v31 }
0x1473   :  { %2618 = vrcp.f32 %v1259_v32 }
0x147d   :  { %v2619_v33 = vpop.eup %2618 }
0x147e   :  { %v1263_v36 = vmul.f32 0.0, %v2619_v33 }
0x14e1   :  { %v1266_v34 = vpop.permute.xlu0 %1265 }
0x14e2   :  { %v1268_v35 = vmul.f32 %v2619_v33, %v1266_v34 }
0x14e4   :  { %1270 = vrot.lane.b32.xlu1 %v1268_v35, %s2793_s3 }
0x1556   :  { %v1271_v37 = vpop.permute.xlu1 %1270 }
0x1557   :  { %v1273_v38 = vadd.f32 %v1271_v37, %v1263_v36 }
0x1559   :  { %2620 = vtanh.f32 %v1273_v38 }
0x155a   :  { %2622 = vtanh.f32 %v994_v40 }
0x155b   :  { %2624 = vpow2.f32 %v2096_v43 }
0x1563   :  { %v2621_v41 = vpop.eup %2620 }
0x1564   :  { %1276 = vrot.lane.b32.xlu0 %v2621_v41, %s2793_s3  ;;  %v2623_v42 = vpop.eup %2622 }
0x1565   :  { %v2625_v44 = vpop.eup %2624 }
0x1566   :  { %v998_v45 = vadd.f32 1.0, %v2625_v44 }
0x1568   :  { %1004 = vrot.lane.b32.xlu0 %v2623_v42, %s2793_s3  ;;  %2626 = vrcp.f32 %v998_v45 }
0x1572   :  { %v2627_v48 = vpop.eup %2626 }
0x1573   :  { %v1002_v53 = vmul.f32 %v2627_v48, %v3079_v14 }
0x15d6   :  { %v1277_v46 = vpop.permute.xlu0 %1276 }
0x15d7   :  { %v1279_v47 = vmul.f32 %v2619_v33, %v1277_v46 }
0x15d9   :  { %1282 = vrot.lane.b32.xlu1 %v1279_v47, %s2794_s24 }
0x15da   :  { %v1005_v49 = vpop.permute.xlu0 %1004 }
0x15db   :  { %v1007_v50 = vmul.f32 %v2627_v48, %v1005_v49 }
0x15dd   :  { %1009 = vrot.lane.b32.xlu0 %v1007_v50, %s2793_s3 }
0x164b   :  { %v1283_v51 = vpop.permute.xlu1 %1282 }
0x164c   :  { %2348 = vmatmul.mubr.msk.f32.vlgmr.msra.gmra.mrb[10].mxu1 %vm93_vm1, %v1283_v51 }
0x164d   :  { %2503 = vmatpush3.bf16.msra.mxu1 %v3083_v18  ;;  %2369 = vmatprep.mubr.msk.f32.mxu1 %vm2787_vm0, %v2788_v1 }
0x164e   :  { %2504 = vmatprep.subr.bf16.mxu1 %v2786_v0 }
0x164f   :  { %v1010_v55 = vpop.permute.xlu0 %1009 }
0x1650   :  { %v1012_v56 = vadd.f32 %v1010_v55, %v1002_v53 }
0x1651   :  { %2506 = vmatpush3.bf16.msra.mxu1 %v3087_v21 }
0x1652   :  { %2628 = vtanh.f32 %v1012_v56  ;;  %2513 = vmatprep.subr.bf16.mxu1 %v2786_v0 }
0x165c   :  { %v2629_v57 = vpop.eup %2628 }
0x165d   :  { %1015 = vrot.lane.b32.xlu0 %v2629_v57, %s2793_s3 }
0x16cf   :  { %v1016_v58 = vpop.permute.xlu0 %1015 }
0x16d0   :  { %v1018_v60 = vmul.f32 %v2627_v48, %v1016_v58 }
0x16d2   :  { %1020 = vrot.lane.b32.xlu0 %v1018_v60, %s2794_s24 }
0x171f   :  { %v1352_v62 = vpop.f32.mrb[10].mxu1 }
0x1720   :  { %v1356_v2 = vadd.f32 %v1352_v62, %v3053_v54  ;;  %v2349_v4 = vpop.f32.mrb[11].mxu1 }
0x1722   :  { %2630 = vtanh.f32 %v1356_v2  ;;  %v2108_v9 = vmul.f32 -1.442695, %v1356_v2 }
0x1724   :  { %2632 = vpow2.f32 %v2108_v9 }
0x172c   :  { %v2631_v5 = vpop.eup %2630 }
0x172d   :  { %1366 = vrot.lane.b32.xlu1 %v2631_v5, %s2793_s3 }
0x172e   :  { %v2633_v11 = vpop.eup %2632 }
0x172f   :  { %v1360_v12 = vadd.f32 1.0, %v2633_v11 }
0x1731   :  { %2634 = vrcp.f32 %v1360_v12 }
0x173b   :  { %v2635_v54 = vpop.eup %2634 }
0x173c   :  { %v1364_v15 = vmul.f32 %v2635_v54, %v1273_v38 }
0x1744   :  { %v1021_v6 = vpop.permute.xlu0 %1020 }
0x1745   :  { %1023 = vst.msk [vmem:[#allocation3 + $0x38] sm:$0xff] %vm93_vm1, %v1021_v6 }
0x174c   :  { %v1040_v8 = vld [vmem:[#allocation3 + $0x38] sm:$0xff] }
0x174d   :  { %2326 = vmatmul.mubr.msk.f32.gmra.mrb[14].mxu0 %vm93_vm1, %v1040_v8 }
0x174e   :  { %2358 = vmatprep.mubr.msk.f32.mxu0 %vm2787_vm0, %v2788_v1 }
0x179f   :  { %v1367_v13 = vpop.permute.xlu1 %1366 }
0x17a0   :  { %v1369_v14 = vmul.f32 %v2635_v54, %v1367_v13 }
0x17a2   :  { %1371 = vrot.lane.b32.xlu1 %v1369_v14, %s2793_s3 }
0x1814   :  { %v1372_v16 = vpop.permute.xlu1 %1371 }
0x1815   :  { %v1374_v17 = vadd.f32 %v1372_v16, %v1364_v15 }
0x1817   :  { %2636 = vtanh.f32 %v1374_v17 }
0x1820   :  { %v2327_v19 = vpop.f32.mrb[14].mxu0 }
0x1821   :  { %v2637_v20 = vpop.eup %2636  ;;  %v3133_v22 = vadd.f32 %v2327_v19, %v3050_v52  ;;  %v1167_v23 = vpop.f32.mrb[15].mxu0 }
0x1822   :  { %v3136_v24 = vadd.f32 %v3050_v52, %v1167_v23  ;;  %1377 = vrot.lane.b32.xlu1 %v2637_v20, %s2793_s3 }
0x1823   :  { %1183 = vst [vmem:[#allocation2 + $0x38] sm:$0xff] %v3133_v22 }
0x1824   :  { %1182 = vst [vmem:[#allocation2 + $0x30] sm:$0xff] %v3136_v24 }
0x1894   :  { %v1378_v25 = vpop.permute.xlu1 %1377 }
0x1895   :  { %v1380_v7 = vmul.f32 %v2635_v54, %v1378_v25 }
0x1897   :  { %1383 = vrot.lane.b32.xlu1 %v1380_v7, %s2794_s24 }
0x1909   :  { %v1384_v26 = vpop.permute.xlu1 %1383 }
0x190a   :  { %2359 = vmatmul.mubr.msk.f32.vlgmr.msra.gmra.mrb[16].mxu0 %vm93_vm1, %v1384_v26 }
0x190b   :  { %2509 = vmatpush3.bf16.msra.mxu0 %v3083_v18  ;;  %2380 = vmatprep.mubr.msk.f32.mxu0 %vm2787_vm0, %v2788_v1 }
0x190c   :  { %2510 = vmatprep.subr.bf16.mxu0 %v2786_v0 }
0x190f   :  { %2512 = vmatpush3.bf16.msra.mxu0 %v3087_v21 }
0x1910   :  { %2519 = vmatprep.subr.bf16.mxu0 %v2786_v0 }
0x19dd   :  { %v1453_v52 = vpop.f32.mrb[16].mxu0 }
0x19de   :  { %v1457_v27 = vadd.f32 %v1453_v52, %v3064_v61  ;;  %v2360_v28 = vpop.f32.mrb[17].mxu0 }
0x19e0   :  { %2638 = vtanh.f32 %v1457_v27  ;;  %v2110_v10 = vmul.f32 -1.442695, %v1457_v27 }
0x19e2   :  { %2640 = vpow2.f32 %v2110_v10 }
0x19ea   :  { %v2639_v29 = vpop.eup %2638 }
0x19eb   :  { %1467 = vrot.lane.b32.xlu0 %v2639_v29, %s2793_s3 }
0x19ec   :  { %v2641_v30 = vpop.eup %2640 }
0x19ed   :  { %v1461_v31 = vadd.f32 1.0, %v2641_v30 }
0x19ef   :  { %2642 = vrcp.f32 %v1461_v31 }
0x19f9   :  { %v2643_v32 = vpop.eup %2642 }
0x19fa   :  { %v1465_v35 = vmul.f32 %v2643_v32, %v1374_v17 }
0x1a5d   :  { %v1468_v33 = vpop.permute.xlu0 %1467 }
0x1a5e   :  { %v1470_v34 = vmul.f32 %v2643_v32, %v1468_v33 }
0x1a60   :  { %1472 = vrot.lane.b32.xlu1 %v1470_v34, %s2793_s3 }
0x1ad2   :  { %v1473_v36 = vpop.permute.xlu1 %1472 }
0x1ad3   :  { %v1475_v37 = vadd.f32 %v1473_v36, %v1465_v35 }
0x1ad5   :  { %2644 = vtanh.f32 %v1475_v37 }
0x1adf   :  { %v2645_v61 = vpop.eup %2644 }
0x1ae0   :  { %1478 = vrot.lane.b32.xlu0 %v2645_v61, %s2793_s3 }
0x1b52   :  { %v1479_v38 = vpop.permute.xlu0 %1478 }
0x1b53   :  { %v1481_v39 = vmul.f32 %v2643_v32, %v1479_v38 }
0x1b55   :  { %1484 = vrot.lane.b32.xlu1 %v1481_v39, %s2794_s24 }
0x1bc7   :  { %v1485_v40 = vpop.permute.xlu1 %1484 }
0x1bc8   :  { %2370 = vmatmul.mubr.msk.f32.vlgmr.msra.gmra.mrb[12].mxu1 %vm93_vm1, %v1485_v40 }
0x1bc9   :  { %2515 = vmatpush3.bf16.msra.mxu1 %v3083_v18  ;;  %2391 = vmatprep.mubr.msk.f32.mxu1 %vm2787_vm0, %v2788_v1 }
0x1bca   :  { %2516 = vmatprep.subr.bf16.mxu1 %v2786_v0 }
0x1bcd   :  { %2518 = vmatpush3.bf16.msra.mxu1 %v3087_v21 }
0x1bce   :  { %2525 = vmatprep.subr.bf16.mxu1 %v2786_v0 }
0x1c9b   :  { %v1554_v41 = vpop.f32.mrb[12].mxu1 }
0x1c9c   :  { %v1558_v42 = vadd.f32 %v1554_v41, %v3061_v59  ;;  %v2371_v43 = vpop.f32.mrb[13].mxu1 }
0x1c9e   :  { %2646 = vtanh.f32 %v1558_v42  ;;  %v2112_v45 = vmul.f32 -1.442695, %v1558_v42 }
0x1ca0   :  { %2648 = vpow2.f32 %v2112_v45 }
0x1ca8   :  { %v2647_v44 = vpop.eup %2646 }
0x1ca9   :  { %1568 = vrot.lane.b32.xlu0 %v2647_v44, %s2793_s3 }
0x1caa   :  { %v2649_v46 = vpop.eup %2648 }
0x1cab   :  { %v1562_v47 = vadd.f32 1.0, %v2649_v46 }
0x1cad   :  { %2650 = vrcp.f32 %v1562_v47 }
0x1cb7   :  { %v2651_v48 = vpop.eup %2650 }
0x1cb8   :  { %v1566_v51 = vmul.f32 %v2651_v48, %v1475_v37 }
0x1d1b   :  { %v1569_v49 = vpop.permute.xlu0 %1568 }
0x1d1c   :  { %v1571_v50 = vmul.f32 %v2651_v48, %v1569_v49 }
0x1d1e   :  { %1573 = vrot.lane.b32.xlu1 %v1571_v50, %s2793_s3 }
0x1d90   :  { %v1574_v53 = vpop.permute.xlu1 %1573 }
0x1d91   :  { %v1576_v55 = vadd.f32 %v1574_v53, %v1566_v51 }
0x1d93   :  { %2652 = vtanh.f32 %v1576_v55 }
0x1d9d   :  { %v2653_v59 = vpop.eup %2652 }
0x1d9e   :  { %1579 = vrot.lane.b32.xlu0 %v2653_v59, %s2793_s3 }
0x1e10   :  { %v1580_v56 = vpop.permute.xlu0 %1579 }
0x1e11   :  { %v1582_v57 = vmul.f32 %v2651_v48, %v1580_v56 }
0x1e13   :  { %1585 = vrot.lane.b32.xlu1 %v1582_v57, %s2794_s24 }
0x1e85   :  { %v1586_v58 = vpop.permute.xlu1 %1585 }
0x1e86   :  { %2381 = vmatmul.mubr.msk.f32.vlgmr.msra.gmra.mrb[18].mxu0 %vm93_vm1, %v1586_v58 }
0x1e87   :  { %2521 = vmatpush3.bf16.msra.mxu0 %v3083_v18  ;;  %2402 = vmatprep.mubr.msk.f32.mxu0 %vm2787_vm0, %v2788_v1 }
0x1e88   :  { %2522 = vmatprep.subr.bf16.mxu0 %v2786_v0 }
0x1e8b   :  { %2524 = vmatpush3.bf16.msra.mxu0 %v3087_v21 }
0x1e8c   :  { %2531 = vmatprep.subr.bf16.mxu0 %v2786_v0 }
0x1f59   :  { %v1655_v60 = vpop.f32.mrb[18].mxu0 }
0x1f5a   :  { %v1659_v62 = vadd.f32 %v1655_v60, %v3073_v3  ;;  %v2382_v2 = vpop.f32.mrb[19].mxu0 }
0x1f5b   :  { %v1988_v2 = vld [vmem:[#allocation9 + $0x8] sm:$0xff] }
0x1f5c   :  { %2654 = vtanh.f32 %v1659_v62  ;;  %v2114_v5 = vmul.f32 -1.442695, %v1659_v62 }
0x1f5e   :  { %2656 = vpow2.f32 %v2114_v5 }
0x1f66   :  { %v2655_v4 = vpop.eup %2654 }
0x1f67   :  { %1669 = vrot.lane.b32.xlu0 %v2655_v4, %s2793_s3  ;;  %v1989_v4 = vld [vmem:[#allocation9 + $0x10] sm:$0xff] }
0x1f68   :  { %v2657_v6 = vpop.eup %2656 }
0x1f69   :  { %v1663_v8 = vadd.f32 1.0, %v2657_v6  ;;  %v1990_v6 = vld [vmem:[#allocation9 + $0x18] sm:$0xff] }
0x1f6b   :  { %2658 = vrcp.f32 %v1663_v8  ;;  %v2535_v8 = vpack.c.bf16 %v1990_v6, %v1989_v4 }
0x1f75   :  { %v2659_v9 = vpop.eup %2658 }
0x1f76   :  { %v1667_v54 = vmul.f32 %v2659_v9, %v1576_v55 }
0x1fd9   :  { %v1670_v11 = vpop.permute.xlu0 %1669 }
0x1fda   :  { %v1672_v12 = vmul.f32 %v2659_v9, %v1670_v11 }
0x1fdc   :  { %1674 = vrot.lane.b32.xlu1 %v1672_v12, %s2793_s3 }
0x204e   :  { %v1675_v13 = vpop.permute.xlu1 %1674 }
0x204f   :  { %v1677_v14 = vadd.f32 %v1675_v13, %v1667_v54  ;;  %v2121_v13 = vld [vmem:[%s3219_s8] ss:$0 sm:$0xff] }
0x2051   :  { %2660 = vtanh.f32 %v1677_v14 }
0x205b   :  { %v2661_v3 = vpop.eup %2660 }
0x205c   :  { %1680 = vrot.lane.b32.xlu0 %v2661_v3, %s2793_s3 }
0x20ce   :  { %v1681_v15 = vpop.permute.xlu0 %1680 }
0x20cf   :  { %v1683_v16 = vmul.f32 %v2659_v9, %v1681_v15 }
0x20d1   :  { %1686 = vrot.lane.b32.xlu1 %v1683_v16, %s2794_s24 }
0x2143   :  { %v1687_v17 = vpop.permute.xlu1 %1686 }
0x2144   :  { %2392 = vmatmul.mubr.msk.f32.vlgmr.msra.gmra.mrb[14].mxu1 %vm93_vm1, %v1687_v17 }
0x2145   :  { %2527 = vmatpush3.bf16.msra.mxu1 %v3083_v18  ;;  %2413 = vmatprep.mubr.msk.f32.mxu1 %vm2787_vm0, %v2788_v1 }
0x2146   :  { %2528 = vmatprep.subr.bf16.mxu1 %v2786_v0 }
0x2149   :  { %2530 = vmatpush3.bf16.msra.mxu1 %v3087_v21 }
0x2217   :  { %v1756_v19 = vpop.f32.mrb[14].mxu1 }
0x2218   :  { %v1760_v20 = vadd.f32 %v1756_v19, %v3070_v63  ;;  %v2393_v23 = vpop.f32.mrb[15].mxu1 }
0x221a   :  { %2662 = vtanh.f32 %v1760_v20  ;;  %v2116_v7 = vmul.f32 -1.442695, %v1760_v20 }
0x221c   :  { %2664 = vpow2.f32 %v2116_v7 }
0x2224   :  { %v2663_v25 = vpop.eup %2662 }
0x2225   :  { %1770 = vrot.lane.b32.xlu0 %v2663_v25, %s2793_s3 }
0x2226   :  { %v2665_v26 = vpop.eup %2664 }
0x2227   :  { %v1764_v52 = vadd.f32 1.0, %v2665_v26 }
0x2229   :  { %2666 = vrcp.f32 %v1764_v52 }
0x2233   :  { %v2667_v18 = vpop.eup %2666 }
0x2234   :  { %v1768_v29 = vmul.f32 %v2667_v18, %v1677_v14 }
0x2297   :  { %v1771_v27 = vpop.permute.xlu0 %1770 }
0x2298   :  { %v1773_v28 = vmul.f32 %v2667_v18, %v1771_v27 }
0x229a   :  { %1775 = vrot.lane.b32.xlu1 %v1773_v28, %s2793_s3 }
0x230c   :  { %v1776_v21 = vpop.permute.xlu1 %1775 }
0x230d   :  { %v1778_v10 = vadd.f32 %v1776_v21, %v1768_v29 }
0x230f   :  { %2668 = vtanh.f32 %v1778_v10 }
0x2319   :  { %v2669_v63 = vpop.eup %2668 }
0x231a   :  { %1781 = vrot.lane.b32.xlu0 %v2669_v63, %s2793_s3 }
0x238c   :  { %v1782_v30 = vpop.permute.xlu0 %1781 }
0x238d   :  { %v1784_v31 = vmul.f32 %v2667_v18, %v1782_v30 }
0x238f   :  { %1787 = vrot.lane.b32.xlu1 %v1784_v31, %s2794_s24 }
0x2401   :  { %v1788_v32 = vpop.permute.xlu1 %1787 }
0x2402   :  { %2403 = vmatmul.mubr.msk.f32.vlgmr.msra.gmra.mrb[20].mxu0 %vm93_vm1, %v1788_v32 }
0x2403   :  { %2424 = vmatprep.mubr.msk.f32.mxu0 %vm2787_vm0, %v2788_v1 }
0x24d5   :  { %v1857_v33 = vpop.f32.mrb[20].mxu0 }
0x24d6   :  { %v1861_v34 = vadd.f32 %v1857_v33, %v3136_v24  ;;  %v2404_v35 = vpop.f32.mrb[21].mxu0 }
0x24d8   :  { %2670 = vtanh.f32 %v1861_v34  ;;  %v2118_v37 = vmul.f32 -1.442695, %v1861_v34 }
0x24da   :  { %2672 = vpow2.f32 %v2118_v37 }
0x24e2   :  { %v2671_v36 = vpop.eup %2670 }
0x24e3   :  { %1871 = vrot.lane.b32.xlu0 %v2671_v36, %s2793_s3 }
0x24e4   :  { %v2673_v61 = vpop.eup %2672 }
0x24e5   :  { %v1865_v38 = vadd.f32 1.0, %v2673_v61 }
0x24e7   :  { %2674 = vrcp.f32 %v1865_v38 }
0x24f1   :  { %v2675_v39 = vpop.eup %2674 }
0x24f2   :  { %v1869_v42 = vmul.f32 %v2675_v39, %v1778_v10 }
0x2555   :  { %v1872_v40 = vpop.permute.xlu0 %1871 }
0x2556   :  { %v1874_v41 = vmul.f32 %v2675_v39, %v1872_v40 }
0x2558   :  { %1876 = vrot.lane.b32.xlu1 %v1874_v41, %s2793_s3 }
0x25ca   :  { %v1877_v1 = vpop.permute.xlu1 %1876 }
0x25cb   :  { %v1879_v43 = vadd.f32 %v1877_v1, %v1869_v42 }
0x25cd   :  { %2676 = vtanh.f32 %v1879_v43 }
0x25d7   :  { %v2677_v24 = vpop.eup %2676 }
0x25d8   :  { %1882 = vrot.lane.b32.xlu0 %v2677_v24, %s2793_s3 }
0x264a   :  { %v1883_v44 = vpop.permute.xlu0 %1882 }
0x264b   :  { %v1885_v45 = vmul.f32 %v2675_v39, %v1883_v44 }
0x264d   :  { %1888 = vrot.lane.b32.xlu1 %v1885_v45, %s2794_s24 }
0x26bf   :  { %v1889_v46 = vpop.permute.xlu1 %1888 }
0x26c0   :  { %2414 = vmatmul.mubr.msk.f32.vlgmr.msra.gmra.mrb[16].mxu1 %vm93_vm1, %v1889_v46 }
0x2793   :  { %v1958_v47 = vpop.f32.mrb[16].mxu1 }
0x2794   :  { %v1962_v48 = vadd.f32 %v1958_v47, %v3133_v22  ;;  %v2415_v49 = vpop.f32.mrb[17].mxu1  ;;  %v1987_v22 = vld [vmem:[#allocation9] sm:$0xff] }
0x2795   :  { %v2532_v5 = vpack.c.bf16 %v1988_v2, %v1987_v22 }
0x2796   :  { %2678 = vtanh.f32 %v1962_v48  ;;  %v2120_v51 = vmul.f32 -1.442695, %v1962_v48 }
0x2797   :  { %2533 = vmatpush3.bf16.msra.mxu0 %v2532_v5 }
0x2798   :  { %2680 = vpow2.f32 %v2120_v51  ;;  %2534 = vmatprep.subr.bf16.mxu0 %v2786_v0 }
0x279b   :  { %2536 = vmatpush3.bf16.msra.mxu0 %v2535_v8 }
0x27a0   :  { %v2679_v50 = vpop.eup %2678 }
0x27a1   :  { %1972 = vrot.lane.b32.xlu0 %v2679_v50, %s2793_s3 }
0x27a2   :  { %v2681_v53 = vpop.eup %2680 }
0x27a3   :  { %v1966_v55 = vadd.f32 1.0, %v2681_v53 }
0x27a5   :  { %2682 = vrcp.f32 %v1966_v55 }
0x27af   :  { %v2683_v59 = vpop.eup %2682 }
0x27b0   :  { %v1970_v58 = vmul.f32 %v2683_v59, %v1879_v43 }
0x2813   :  { %v1973_v56 = vpop.permute.xlu0 %1972 }
0x2814   :  { %v1975_v57 = vmul.f32 %v2683_v59, %v1973_v56 }
0x2816   :  { %1977 = vrot.lane.b32.xlu1 %v1975_v57, %s2793_s3 }
0x2888   :  { %v1978_v60 = vpop.permute.xlu1 %1977 }
0x2889   :  { %v1980_v62 = vadd.f32 %v1978_v60, %v1970_v58 }
0x288b   :  { %2684 = vtanh.f32 %v1980_v62 }
0x2895   :  { %v2685_v9 = vpop.eup %2684 }
0x2896   :  { %1983 = vrot.lane.b32.xlu0 %v2685_v9, %s2793_s3 }
0x2908   :  { %v1984_v11 = vpop.permute.xlu0 %1983 }
0x2909   :  { %v1986_v12 = vmul.f32 %v2683_v59, %v1984_v11 }
0x290b   :  { %1999 = vrot.lane.b32.xlu1 %v1986_v12, %s2794_s24 }
0x297d   :  { %v2000_v54 = vpop.permute.xlu1 %1999 }
0x297e   :  { %2425 = vmatmul.mubr.msk.f32.vlgmr.msra.gmra.mrb[22].mxu0 %vm93_vm1, %v2000_v54 }
0x2a51   :  { %v2069_v14 = vpop.f32.mrb[22].mxu0 }
0x2a52   :  { %v2070_v3 = vadd.f32 %v2121_v13, %v2069_v14  ;;  %v2426_v15 = vpop.f32.mrb[23].mxu0 }
0x2a54   :  { %2073 = vst [vmem:[%s3220_s9] sm:$0xff] %v2070_v3 }
0x2a55   :  { %2078 = vsyncpa [#allocation5], 1 }
0x2a56   :  { %2079 = vsyncpa [#allocation7], 1 }
0x2a57   :  { %2080 = vsyncpa [#allocation10], 1 }

</bundles_post_ra>
